<compile_context>
chip_gen: v5e
topology: v5e:2x2
jax: 0.10.0
libtpu: 0.0.40
codegen_flags: <defaults>
</compile_context>

<pallas_src>
import math

import jax
import jax.numpy as jnp
import numpy as np
from jax import lax
from jax.experimental import pallas as pl
from jax.experimental.pallas import tpu as pltpu

# The PyTorch module reads these from module-level globals; chosen small here.
CNN_CONV_MID_CHANNELS = 8
CNN_OUT_CHANNELS = 16
CNN_FC_HIDDEN = 32
FC_PAD = 128           # lane padding for the FC tail / kernel output
MAX_B_TILE = 8         # samples stacked per grid step (M = B_TILE * H)


def init_params(key, input_channels, output_size):
    """Deterministic kaiming_normal(fan_out, relu) weights, zero biases,
    kept in the original PyTorch layouts (OIHW conv, (out,in) linear)."""
    mid, out_c, hid = CNN_CONV_MID_CHANNELS, CNN_OUT_CHANNELS, CNN_FC_HIDDEN
    conv_dims = [(mid, input_channels), (mid, mid), (mid, mid), (out_c, mid)]
    fc_dims = [(hid, out_c), (hid, hid), (output_size, hid)]
    keys = jax.random.split(key, len(conv_dims) + len(fc_dims))
    cw, cb, fw, fb = [], [], [], []
    for i, (co, ci) in enumerate(conv_dims):
        std = (2.0 / (co * 3 * 3)) ** 0.5                    # fan_out = co*k*k
        cw.append(std * jax.random.normal(keys[i], (co, ci, 3, 3), jnp.float32))
        cb.append(jnp.zeros((co,), jnp.float32))
    for j, (o, i_) in enumerate(fc_dims):
        std = (2.0 / o) ** 0.5                               # fan_out = out
        fw.append(std * jax.random.normal(keys[len(conv_dims) + j], (o, i_),
                                          jnp.float32))
        fb.append(jnp.zeros((o,), jnp.float32))
    return cw, cb, fw, fb


def _pad_channels(c, width):
    """Smallest c_pad >= c such that width * c_pad is a multiple of 128 lanes."""
    m = 128 // math.gcd(width, 128)
    return -(-c // m) * m


def _conv_band_weight(w, ci_pad, co_pad, width):
    """Torch OIHW (co,ci,3,3) -> kh-fused banded (3*W*ci_pad, W*co_pad) bf16.

    Lane layout: lane = w * C + c.  Tap (kh, kw) contributes
        out[h, w_out*Co+co] += in[h+kh-1, w_in*Ci+ci] * w[co, ci, kh, w_in-w_out+1]
    for |w_in - w_out| <= 1, so the 3 kw taps form a banded block matrix
    (out-of-band entries are zero => implicit zero padding along W) and the
    3 kh taps are stacked along K in the order [row-1; row; row+1], matching
    the kernel's lane-concatenated [prev, act, next] fused input."""
    co, ci = w.shape[0], w.shape[1]
    blocks = jnp.transpose(w, (2, 3, 1, 0))                     # (kh, kw, ci, co)
    blocks = jnp.pad(blocks, ((0, 0), (0, 0),
                              (0, ci_pad - ci), (0, co_pad - co)))
    wc_in, wc_out = width * ci_pad, width * co_pad
    ridx, cidx = jnp.arange(wc_in), jnp.arange(wc_out)
    w_in, ci_i = ridx // ci_pad, ridx % ci_pad
    w_out, co_i = cidx // co_pad, cidx % co_pad
    dw = w_in[:, None] - w_out[None, :]                         # w_in - w_out
    kw = jnp.clip(dw + 1, 0, 2)
    vals = blocks[:, kw, ci_i[:, None], co_i[None, :]]          # (3, wc_in, wc_out)
    banded = jnp.where((jnp.abs(dw) <= 1)[None], vals, 0.0)
    return banded.reshape(3 * wc_in, wc_out).astype(jnp.bfloat16)


def _conv_band_bias(b, co_pad, width):
    """(co,) bias -> (1, W*co_pad) f32, replicated per spatial column."""
    return jnp.tile(jnp.pad(b, (0, co_pad - b.shape[0])),
                    width).reshape(1, width * co_pad).astype(jnp.float32)


def snake_cnn_forward(x_nchw, params):
    cw, cb, fw, fb = params
    N, c_in, H, W = x_nchw.shape
    mid, out_c = cw[0].shape[0], cw[-1].shape[0]
    hid, out_size = fw[0].shape[0], fw[-1].shape[0]

    # Per-layer channel padding (conv1-3: W*8 = 128 lanes; conv4 out: 256).
    c1 = _pad_channels(max(c_in, 1), W)
    cm = _pad_channels(mid, W)
    c4 = _pad_channels(out_c, W)
    WC1, WC4 = W * c1, W * c4

    # Batch tiling: stack b_tile samples along sublanes (M = b_tile * H).
    b_tile = MAX_B_TILE if N >= MAX_B_TILE else N
    n_pad = -(-N // b_tile) * b_tile
    n_steps = n_pad // b_tile
    M = b_tile * H
    inv_hw = 1.0 / float(H * W)

    # ---- glue: NCHW -> lane-dense (n_pad*H, W*c1) bf16 ----
    x = jnp.transpose(x_nchw, (0, 2, 3, 1)).astype(jnp.float32)     # NHWC
    x = jnp.pad(x, ((0, n_pad - N), (0, 0), (0, 0), (0, c1 - c_in)))
    x = x.reshape(n_pad * H, WC1).astype(jnp.bfloat16)

    conv_args = []
    ci_pads = [c1, cm, cm, cm]
    co_pads = [cm, cm, cm, c4]
    for w, b, cip, cop in zip(cw, cb, ci_pads, co_pads):
        conv_args.append(_conv_band_weight(w, cip, cop, W))
        conv_args.append(_conv_band_bias(b, cop, W))

    # FC tail (kept f32 - it is tiny): fold the mean over W into fc1's weight.
    # The 1/(H*W) normalization is applied in-kernel on the f32 column sum.
    fw1t = jnp.pad(fw[0].T, ((0, c4 - out_c), (0, FC_PAD - hid)))
    pool_w = jnp.tile(jnp.eye(c4, dtype=jnp.float32), (W, 1))        # (WC4, c4)
    fc1_eff = (pool_w @ fw1t).astype(jnp.float32)                    # (WC4, 128)
    fb1 = jnp.pad(fb[0], (0, FC_PAD - hid)).reshape(1, FC_PAD).astype(jnp.float32)
    fw2 = jnp.pad(fw[1].T, ((0, FC_PAD - hid), (0, FC_PAD - hid))).astype(jnp.float32)
    fb2 = jnp.pad(fb[1], (0, FC_PAD - hid)).reshape(1, FC_PAD).astype(jnp.float32)
    fw3 = jnp.pad(fw[2].T, ((0, FC_PAD - hid), (0, FC_PAD - out_size))).astype(jnp.float32)
    fb3 = jnp.pad(fb[2], (0, FC_PAD - out_size)).reshape(1, FC_PAD).astype(jnp.float32)
    fc_args = [fc1_eff, fb1, fw2, fb2, fw3, fb3]

    def kernel(x_ref,
               cw1, cb1, cw2, cb2, cw3, cb3, cw4, cb4,
               fw1_ref, fb1_ref, fw2_ref, fb2_ref, fw3_ref, fb3_ref,
               out_ref):
        # Per-sample H boundary masks (samples are stacked along sublanes);
        # computed once per grid step, reused by all 4 conv layers.
        row = lax.broadcasted_iota(jnp.int32, (M, 1), 0)
        has_prev_row = (row % H) != 0           # row h-1 exists within sample
        has_next_row = (row % H) != (H - 1)     # row h+1 exists within sample

        def conv3x3(act, w_ref, b_ref, relu):
            # act: (M, WC_in) f32.  One fused MXU matmul per layer:
            # lanes = [row-1 | row | row+1] (kh folded into K = 3*WC_in);
            # kw taps live in the banded weight (implicit zero-pad along W);
            # zero-pad along H via the per-sample boundary masks.
            prev = jnp.where(has_prev_row, pltpu.roll(act, 1, axis=0), 0.0)
            nxt = jnp.where(has_next_row, pltpu.roll(act, M - 1, axis=0), 0.0)
            fused = jnp.concatenate([prev, act, nxt], axis=1).astype(jnp.bfloat16)
            z = jnp.dot(fused, w_ref[...],
                        preferred_element_type=jnp.float32) + b_ref[...]
            return jnp.maximum(z, 0.0) if relu else z

        a = x_ref[...].astype(jnp.float32)                     # (M, WC1)
        a = conv3x3(a, cw1, cb1, True)
        a = conv3x3(a, cw2, cb2, True)
        a = conv3x3(a, cw3, cb3, True)
        a = conv3x3(a, cw4, cb4, False)                        # (M, WC4), no ReLU

        # AdaptiveAvgPool2d((1,1)) + flatten(1) + fc: mean over H is a
        # per-sample sublane reduce; mean over W is folded into fw1_ref.
        # Normalize in f32 before the matmul (precision fix).
        pooled = jnp.sum(a.reshape(b_tile, H, WC4), axis=1) * inv_hw
        h = jnp.dot(pooled, fw1_ref[...],
                    preferred_element_type=jnp.float32) + fb1_ref[...]
        h = jnp.maximum(h, 0.0)
        h = jnp.dot(h, fw2_ref[...],
                    preferred_element_type=jnp.float32) + fb2_ref[...]
        h = jnp.maximum(h, 0.0)
        out_ref[...] = jnp.dot(h, fw3_ref[...],
                               preferred_element_type=jnp.float32) + fb3_ref[...]

    def resident_spec(a):
        # Constant block index across the batch grid -> weight DMA'd once,
        # stays VMEM-resident for every grid step.
        nd = a.ndim
        return pl.BlockSpec(a.shape, lambda n, _nd=nd: (0,) * _nd)

    in_specs = [pl.BlockSpec((M, WC1), lambda n: (n, 0))]
    in_specs += [resident_spec(a) for a in conv_args]
    in_specs += [resident_spec(a) for a in fc_args]

    out = pl.pallas_call(
        kernel,
        out_shape=jax.ShapeDtypeStruct((n_pad, FC_PAD), jnp.float32),
        grid=(n_steps,),
        in_specs=in_specs,
        out_specs=pl.BlockSpec((b_tile, FC_PAD), lambda n: (n, 0)),
        compiler_params=pltpu.CompilerParams(
            dimension_semantics=("parallel",),
            vmem_limit_bytes=32 * 1024 * 1024),
    )(x, *conv_args, *fc_args)

    return out[:N, :out_size]


def reference_forward(x, params):
    """Pure-JAX f32 reference matching the PyTorch semantics (NCHW)."""
    cw, cb, fw, fb = params
    a = x
    for i, (w, b) in enumerate(zip(cw, cb)):
        a = lax.conv_general_dilated(
            a, w, (1, 1), ((1, 1), (1, 1)),
            dimension_numbers=('NCHW', 'OIHW', 'NCHW'),
            precision=lax.Precision.HIGHEST) + b[None, :, None, None]
        if i < len(cw) - 1:                      # no ReLU after the last conv
            a = jnp.maximum(a, 0.0)
    p = jnp.mean(a, axis=(2, 3))
    h = jnp.maximum(jnp.dot(p, fw[0].T, precision=lax.Precision.HIGHEST) + fb[0], 0.0)
    h = jnp.maximum(jnp.dot(h, fw[1].T, precision=lax.Precision.HIGHEST) + fb[1], 0.0)
    return jnp.dot(h, fw[2].T, precision=lax.Precision.HIGHEST) + fb[2]


if __name__ == "__main__":
    key = jax.random.PRNGKey(0)
    pkey, xkey = jax.random.split(key)
    input_channels, output_size = 4, 4
    params = init_params(pkey, input_channels, output_size)
    x = jax.random.normal(xkey, (2, input_channels, 16, 16), jnp.float32)

    out = jax.block_until_ready(snake_cnn_forward(x, params))
    ref = reference_forward(x, params)
    assert out.shape == ref.shape == (2, output_size)
    # Conv path stores activations/weights in bf16 (f32 MXU accumulation);
    # the FC tail is f32, so the tolerance is governed by the conv path.
    np.testing.assert_allclose(np.asarray(out), np.asarray(ref),
                               rtol=3e-2, atol=3e-2)
    print("KERNEL_OK")
</pallas_src>

<mosaic_0001>
module attributes {stable_mosaic.version = 11 : i64} {
  func.func @kernel(%arg0: i32, %arg1: memref<32x128xbf16, #tpu.memory_space<vmem>>, %arg2: memref<384x128xbf16, #tpu.memory_space<vmem>>, %arg3: memref<1x128xf32, #tpu.memory_space<vmem>>, %arg4: memref<384x128xbf16, #tpu.memory_space<vmem>>, %arg5: memref<1x128xf32, #tpu.memory_space<vmem>>, %arg6: memref<384x128xbf16, #tpu.memory_space<vmem>>, %arg7: memref<1x128xf32, #tpu.memory_space<vmem>>, %arg8: memref<384x256xbf16, #tpu.memory_space<vmem>>, %arg9: memref<1x256xf32, #tpu.memory_space<vmem>>, %arg10: memref<256x128xf32, #tpu.memory_space<vmem>>, %arg11: memref<1x128xf32, #tpu.memory_space<vmem>>, %arg12: memref<128x128xf32, #tpu.memory_space<vmem>>, %arg13: memref<1x128xf32, #tpu.memory_space<vmem>>, %arg14: memref<128x128xf32, #tpu.memory_space<vmem>>, %arg15: memref<1x128xf32, #tpu.memory_space<vmem>>, %arg16: memref<2x128xf32, #tpu.memory_space<vmem>>) attributes {dimension_semantics = [#tpu.dimension_semantics<parallel>], iteration_bounds = array<i64: 1>, scalar_prefetch = 0 : i64, scratch_operands = 0 : i64, tpu.core_type = #tpu.core_type<tc>, window_params = [{transform_indices = @transform_0, window_bounds = array<i64: 32, 128>}, {pipeline_mode = #tpu.pipeline_mode<synchronous>, transform_indices = @transform_1, window_bounds = array<i64: 384, 128>}, {pipeline_mode = #tpu.pipeline_mode<synchronous>, transform_indices = @transform_2, window_bounds = array<i64: 1, 128>}, {pipeline_mode = #tpu.pipeline_mode<synchronous>, transform_indices = @transform_3, window_bounds = array<i64: 384, 128>}, {pipeline_mode = #tpu.pipeline_mode<synchronous>, transform_indices = @transform_4, window_bounds = array<i64: 1, 128>}, {pipeline_mode = #tpu.pipeline_mode<synchronous>, transform_indices = @transform_5, window_bounds = array<i64: 384, 128>}, {pipeline_mode = #tpu.pipeline_mode<synchronous>, transform_indices = @transform_6, window_bounds = array<i64: 1, 128>}, {pipeline_mode = #tpu.pipeline_mode<synchronous>, transform_indices = @transform_7, window_bounds = array<i64: 384, 256>}, {pipeline_mode = #tpu.pipeline_mode<synchronous>, transform_indices = @transform_8, window_bounds = array<i64: 1, 256>}, {pipeline_mode = #tpu.pipeline_mode<synchronous>, transform_indices = @transform_9, window_bounds = array<i64: 256, 128>}, {pipeline_mode = #tpu.pipeline_mode<synchronous>, transform_indices = @transform_10, window_bounds = array<i64: 1, 128>}, {pipeline_mode = #tpu.pipeline_mode<synchronous>, transform_indices = @transform_11, window_bounds = array<i64: 128, 128>}, {pipeline_mode = #tpu.pipeline_mode<synchronous>, transform_indices = @transform_12, window_bounds = array<i64: 1, 128>}, {pipeline_mode = #tpu.pipeline_mode<synchronous>, transform_indices = @transform_13, window_bounds = array<i64: 128, 128>}, {pipeline_mode = #tpu.pipeline_mode<synchronous>, transform_indices = @transform_14, window_bounds = array<i64: 1, 128>}, {transform_indices = @transform_15, window_bounds = array<i64: 2, 128>}]} {
    %0 = tpu.iota {dimensions = array<i32: 0>} : vector<32x1xi32>
    %c16_i32 = arith.constant 16 : i32
    %c0_i32 = arith.constant 0 : i32
    %1 = arith.cmpi eq, %c16_i32, %c0_i32 : i32
    %c1_i32 = arith.constant 1 : i32
    %2 = arith.select %1, %c1_i32, %c16_i32 : i32
    %3 = vector.broadcast %2 : i32 to vector<32x1xi32>
    %4 = arith.remsi %0, %3 : vector<32x1xi32>
    %c0_i32_0 = arith.constant 0 : i32
    %5 = vector.broadcast %c0_i32_0 : i32 to vector<32x1xi32>
    %6 = arith.cmpi ne, %4, %5 : vector<32x1xi32>
    %c0_i32_1 = arith.constant 0 : i32
    %7 = vector.broadcast %c0_i32_1 : i32 to vector<32x1xi32>
    %8 = arith.cmpi slt, %4, %7 : vector<32x1xi32>
    %c0_i32_2 = arith.constant 0 : i32
    %9 = arith.cmpi slt, %2, %c0_i32_2 : i32
    %10 = vector.broadcast %9 : i1 to vector<32x1xi1>
    %11 = vector.broadcast %10 : vector<32x1xi1> to vector<32x1xi1>
    %12 = arith.xori %8, %11 : vector<32x1xi1>
    %13 = arith.andi %12, %6 : vector<32x1xi1>
    %14 = vector.broadcast %2 : i32 to vector<32x1xi32>
    %15 = arith.addi %4, %14 : vector<32x1xi32>
    %16 = arith.select %13, %15, %4 : vector<32x1xi1>, vector<32x1xi32>
    %c0_i32_3 = arith.constant 0 : i32
    %17 = vector.broadcast %c0_i32_3 : i32 to vector<32x1xi32>
    %18 = arith.cmpi ne, %16, %17 : vector<32x1xi32>
    %c16_i32_4 = arith.constant 16 : i32
    %c0_i32_5 = arith.constant 0 : i32
    %19 = arith.cmpi eq, %c16_i32_4, %c0_i32_5 : i32
    %c1_i32_6 = arith.constant 1 : i32
    %20 = arith.select %19, %c1_i32_6, %c16_i32_4 : i32
    %21 = vector.broadcast %20 : i32 to vector<32x1xi32>
    %22 = arith.remsi %0, %21 : vector<32x1xi32>
    %c0_i32_7 = arith.constant 0 : i32
    %23 = vector.broadcast %c0_i32_7 : i32 to vector<32x1xi32>
    %24 = arith.cmpi ne, %22, %23 : vector<32x1xi32>
    %c0_i32_8 = arith.constant 0 : i32
    %25 = vector.broadcast %c0_i32_8 : i32 to vector<32x1xi32>
    %26 = arith.cmpi slt, %22, %25 : vector<32x1xi32>
    %c0_i32_9 = arith.constant 0 : i32
    %27 = arith.cmpi slt, %20, %c0_i32_9 : i32
    %28 = vector.broadcast %27 : i1 to vector<32x1xi1>
    %29 = vector.broadcast %28 : vector<32x1xi1> to vector<32x1xi1>
    %30 = arith.xori %26, %29 : vector<32x1xi1>
    %31 = arith.andi %30, %24 : vector<32x1xi1>
    %32 = vector.broadcast %20 : i32 to vector<32x1xi32>
    %33 = arith.addi %22, %32 : vector<32x1xi32>
    %34 = arith.select %31, %33, %22 : vector<32x1xi1>, vector<32x1xi32>
    %c15_i32 = arith.constant 15 : i32
    %35 = vector.broadcast %c15_i32 : i32 to vector<32x1xi32>
    %36 = arith.cmpi ne, %34, %35 : vector<32x1xi32>
    %c0 = arith.constant 0 : index
    %c0_10 = arith.constant 0 : index
    %37 = vector.load %arg1[%c0, %c0_10] : memref<32x128xbf16, #tpu.memory_space<vmem>>, vector<32x128xbf16>
    %38 = arith.extf %37 : vector<32x128xbf16> to vector<32x128xf32>
    %c1_i32_11 = arith.constant 1 : i32
    %39 = tpu.dynamic_rotate %38 by %c1_i32_11 dim 0 : vector<32x128xf32>, i32 -> vector<32x128xf32>
    %cst = arith.constant 0.000000e+00 : f32
    %40 = vector.shape_cast %18 : vector<32x1xi1> to vector<32x1xi1>
    %41 = vector.broadcast %40 : vector<32x1xi1> to vector<32x128xi1>
    %42 = vector.broadcast %cst : f32 to vector<32x128xf32>
    %43 = arith.select %41, %39, %42 : vector<32x128xi1>, vector<32x128xf32>
    %c31_i32 = arith.constant 31 : i32
    %44 = tpu.dynamic_rotate %38 by %c31_i32 dim 0 : vector<32x128xf32>, i32 -> vector<32x128xf32>
    %cst_12 = arith.constant 0.000000e+00 : f32
    %45 = vector.shape_cast %36 : vector<32x1xi1> to vector<32x1xi1>
    %46 = vector.broadcast %45 : vector<32x1xi1> to vector<32x128xi1>
    %47 = vector.broadcast %cst_12 : f32 to vector<32x128xf32>
    %48 = arith.select %46, %44, %47 : vector<32x128xi1>, vector<32x128xf32>
    %49 = tpu.concatenate %43, %38, %48 in 1 : vector<32x128xf32>, vector<32x128xf32>, vector<32x128xf32> -> vector<32x384xf32>
    %50 = arith.truncf %49 : vector<32x384xf32> to vector<32x384xbf16>
    %c0_13 = arith.constant 0 : index
    %c0_14 = arith.constant 0 : index
    %51 = vector.load %arg2[%c0_13, %c0_14] : memref<384x128xbf16, #tpu.memory_space<vmem>>, vector<384x128xbf16>
    %cst_15 = arith.constant dense<0.000000e+00> : vector<32x128xf32>
    %52 = tpu.matmul %50, %51, %cst_15 {dimension_numbers = #tpu.dot_dimension_numbers<[1], [0], [0], [1], [0, 0, 1, 1], [], []>} : vector<32x384xbf16>, vector<384x128xbf16>, vector<32x128xf32> -> vector<32x128xf32>
    %c0_16 = arith.constant 0 : index
    %c0_17 = arith.constant 0 : index
    %53 = vector.load %arg3[%c0_16, %c0_17] : memref<1x128xf32, #tpu.memory_space<vmem>>, vector<1x128xf32>
    %54 = vector.broadcast %53 : vector<1x128xf32> to vector<32x128xf32>
    %55 = arith.addf %52, %54 : vector<32x128xf32>
    %cst_18 = arith.constant 0.000000e+00 : f32
    %56 = vector.broadcast %cst_18 : f32 to vector<32x128xf32>
    %57 = arith.maximumf %55, %56 : vector<32x128xf32>
    %c1_i32_19 = arith.constant 1 : i32
    %58 = tpu.dynamic_rotate %57 by %c1_i32_19 dim 0 : vector<32x128xf32>, i32 -> vector<32x128xf32>
    %cst_20 = arith.constant 0.000000e+00 : f32
    %59 = vector.shape_cast %18 : vector<32x1xi1> to vector<32x1xi1>
    %60 = vector.broadcast %59 : vector<32x1xi1> to vector<32x128xi1>
    %61 = vector.broadcast %cst_20 : f32 to vector<32x128xf32>
    %62 = arith.select %60, %58, %61 : vector<32x128xi1>, vector<32x128xf32>
    %c31_i32_21 = arith.constant 31 : i32
    %63 = tpu.dynamic_rotate %57 by %c31_i32_21 dim 0 : vector<32x128xf32>, i32 -> vector<32x128xf32>
    %cst_22 = arith.constant 0.000000e+00 : f32
    %64 = vector.shape_cast %36 : vector<32x1xi1> to vector<32x1xi1>
    %65 = vector.broadcast %64 : vector<32x1xi1> to vector<32x128xi1>
    %66 = vector.broadcast %cst_22 : f32 to vector<32x128xf32>
    %67 = arith.select %65, %63, %66 : vector<32x128xi1>, vector<32x128xf32>
    %68 = tpu.concatenate %62, %57, %67 in 1 : vector<32x128xf32>, vector<32x128xf32>, vector<32x128xf32> -> vector<32x384xf32>
    %69 = arith.truncf %68 : vector<32x384xf32> to vector<32x384xbf16>
    %c0_23 = arith.constant 0 : index
    %c0_24 = arith.constant 0 : index
    %70 = vector.load %arg4[%c0_23, %c0_24] : memref<384x128xbf16, #tpu.memory_space<vmem>>, vector<384x128xbf16>
    %cst_25 = arith.constant dense<0.000000e+00> : vector<32x128xf32>
    %71 = tpu.matmul %69, %70, %cst_25 {dimension_numbers = #tpu.dot_dimension_numbers<[1], [0], [0], [1], [0, 0, 1, 1], [], []>} : vector<32x384xbf16>, vector<384x128xbf16>, vector<32x128xf32> -> vector<32x128xf32>
    %c0_26 = arith.constant 0 : index
    %c0_27 = arith.constant 0 : index
    %72 = vector.load %arg5[%c0_26, %c0_27] : memref<1x128xf32, #tpu.memory_space<vmem>>, vector<1x128xf32>
    %73 = vector.broadcast %72 : vector<1x128xf32> to vector<32x128xf32>
    %74 = arith.addf %71, %73 : vector<32x128xf32>
    %cst_28 = arith.constant 0.000000e+00 : f32
    %75 = vector.broadcast %cst_28 : f32 to vector<32x128xf32>
    %76 = arith.maximumf %74, %75 : vector<32x128xf32>
    %c1_i32_29 = arith.constant 1 : i32
    %77 = tpu.dynamic_rotate %76 by %c1_i32_29 dim 0 : vector<32x128xf32>, i32 -> vector<32x128xf32>
    %cst_30 = arith.constant 0.000000e+00 : f32
    %78 = vector.shape_cast %18 : vector<32x1xi1> to vector<32x1xi1>
    %79 = vector.broadcast %78 : vector<32x1xi1> to vector<32x128xi1>
    %80 = vector.broadcast %cst_30 : f32 to vector<32x128xf32>
    %81 = arith.select %79, %77, %80 : vector<32x128xi1>, vector<32x128xf32>
    %c31_i32_31 = arith.constant 31 : i32
    %82 = tpu.dynamic_rotate %76 by %c31_i32_31 dim 0 : vector<32x128xf32>, i32 -> vector<32x128xf32>
    %cst_32 = arith.constant 0.000000e+00 : f32
    %83 = vector.shape_cast %36 : vector<32x1xi1> to vector<32x1xi1>
    %84 = vector.broadcast %83 : vector<32x1xi1> to vector<32x128xi1>
    %85 = vector.broadcast %cst_32 : f32 to vector<32x128xf32>
    %86 = arith.select %84, %82, %85 : vector<32x128xi1>, vector<32x128xf32>
    %87 = tpu.concatenate %81, %76, %86 in 1 : vector<32x128xf32>, vector<32x128xf32>, vector<32x128xf32> -> vector<32x384xf32>
    %88 = arith.truncf %87 : vector<32x384xf32> to vector<32x384xbf16>
    %c0_33 = arith.constant 0 : index
    %c0_34 = arith.constant 0 : index
    %89 = vector.load %arg6[%c0_33, %c0_34] : memref<384x128xbf16, #tpu.memory_space<vmem>>, vector<384x128xbf16>
    %cst_35 = arith.constant dense<0.000000e+00> : vector<32x128xf32>
    %90 = tpu.matmul %88, %89, %cst_35 {dimension_numbers = #tpu.dot_dimension_numbers<[1], [0], [0], [1], [0, 0, 1, 1], [], []>} : vector<32x384xbf16>, vector<384x128xbf16>, vector<32x128xf32> -> vector<32x128xf32>
    %c0_36 = arith.constant 0 : index
    %c0_37 = arith.constant 0 : index
    %91 = vector.load %arg7[%c0_36, %c0_37] : memref<1x128xf32, #tpu.memory_space<vmem>>, vector<1x128xf32>
    %92 = vector.broadcast %91 : vector<1x128xf32> to vector<32x128xf32>
    %93 = arith.addf %90, %92 : vector<32x128xf32>
    %cst_38 = arith.constant 0.000000e+00 : f32
    %94 = vector.broadcast %cst_38 : f32 to vector<32x128xf32>
    %95 = arith.maximumf %93, %94 : vector<32x128xf32>
    %c1_i32_39 = arith.constant 1 : i32
    %96 = tpu.dynamic_rotate %95 by %c1_i32_39 dim 0 : vector<32x128xf32>, i32 -> vector<32x128xf32>
    %cst_40 = arith.constant 0.000000e+00 : f32
    %97 = vector.shape_cast %18 : vector<32x1xi1> to vector<32x1xi1>
    %98 = vector.broadcast %97 : vector<32x1xi1> to vector<32x128xi1>
    %99 = vector.broadcast %cst_40 : f32 to vector<32x128xf32>
    %100 = arith.select %98, %96, %99 : vector<32x128xi1>, vector<32x128xf32>
    %c31_i32_41 = arith.constant 31 : i32
    %101 = tpu.dynamic_rotate %95 by %c31_i32_41 dim 0 : vector<32x128xf32>, i32 -> vector<32x128xf32>
    %cst_42 = arith.constant 0.000000e+00 : f32
    %102 = vector.shape_cast %36 : vector<32x1xi1> to vector<32x1xi1>
    %103 = vector.broadcast %102 : vector<32x1xi1> to vector<32x128xi1>
    %104 = vector.broadcast %cst_42 : f32 to vector<32x128xf32>
    %105 = arith.select %103, %101, %104 : vector<32x128xi1>, vector<32x128xf32>
    %106 = tpu.concatenate %100, %95, %105 in 1 : vector<32x128xf32>, vector<32x128xf32>, vector<32x128xf32> -> vector<32x384xf32>
    %107 = arith.truncf %106 : vector<32x384xf32> to vector<32x384xbf16>
    %c0_43 = arith.constant 0 : index
    %c0_44 = arith.constant 0 : index
    %108 = vector.load %arg8[%c0_43, %c0_44] : memref<384x256xbf16, #tpu.memory_space<vmem>>, vector<384x256xbf16>
    %cst_45 = arith.constant dense<0.000000e+00> : vector<32x256xf32>
    %109 = tpu.matmul %107, %108, %cst_45 {dimension_numbers = #tpu.dot_dimension_numbers<[1], [0], [0], [1], [0, 0, 1, 1], [], []>} : vector<32x384xbf16>, vector<384x256xbf16>, vector<32x256xf32> -> vector<32x256xf32>
    %c0_46 = arith.constant 0 : index
    %c0_47 = arith.constant 0 : index
    %110 = vector.load %arg9[%c0_46, %c0_47] : memref<1x256xf32, #tpu.memory_space<vmem>>, vector<1x256xf32>
    %111 = vector.broadcast %110 : vector<1x256xf32> to vector<32x256xf32>
    %112 = arith.addf %109, %111 : vector<32x256xf32>
    %113 = vector.shape_cast %112 : vector<32x256xf32> to vector<2x16x256xf32>
    %cst_48 = arith.constant dense<0.000000e+00> : vector<2x256xf32>
    %114 = vector.multi_reduction <add>, %113, %cst_48 [1] : vector<2x16x256xf32> to vector<2x256xf32>
    %cst_49 = arith.constant 3.906250e-03 : f32
    %115 = vector.broadcast %cst_49 : f32 to vector<2x256xf32>
    %116 = arith.mulf %114, %115 : vector<2x256xf32>
    %c0_50 = arith.constant 0 : index
    %c0_51 = arith.constant 0 : index
    %117 = vector.load %arg10[%c0_50, %c0_51] : memref<256x128xf32, #tpu.memory_space<vmem>>, vector<256x128xf32>
    %cst_52 = arith.constant dense<0.000000e+00> : vector<2x128xf32>
    %118 = tpu.matmul %116, %117, %cst_52 {dimension_numbers = #tpu.dot_dimension_numbers<[1], [0], [0], [1], [0, 0, 1, 1], [], []>} : vector<2x256xf32>, vector<256x128xf32>, vector<2x128xf32> -> vector<2x128xf32>
    %c0_53 = arith.constant 0 : index
    %c0_54 = arith.constant 0 : index
    %119 = vector.load %arg11[%c0_53, %c0_54] : memref<1x128xf32, #tpu.memory_space<vmem>>, vector<1x128xf32>
    %120 = vector.broadcast %119 : vector<1x128xf32> to vector<2x128xf32>
    %121 = arith.addf %118, %120 : vector<2x128xf32>
    %cst_55 = arith.constant 0.000000e+00 : f32
    %122 = vector.broadcast %cst_55 : f32 to vector<2x128xf32>
    %123 = arith.maximumf %121, %122 : vector<2x128xf32>
    %c0_56 = arith.constant 0 : index
    %c0_57 = arith.constant 0 : index
    %124 = vector.load %arg12[%c0_56, %c0_57] : memref<128x128xf32, #tpu.memory_space<vmem>>, vector<128x128xf32>
    %cst_58 = arith.constant dense<0.000000e+00> : vector<2x128xf32>
    %125 = tpu.matmul %123, %124, %cst_58 {dimension_numbers = #tpu.dot_dimension_numbers<[1], [0], [0], [1], [0, 0, 1, 1], [], []>} : vector<2x128xf32>, vector<128x128xf32>, vector<2x128xf32> -> vector<2x128xf32>
    %c0_59 = arith.constant 0 : index
    %c0_60 = arith.constant 0 : index
    %126 = vector.load %arg13[%c0_59, %c0_60] : memref<1x128xf32, #tpu.memory_space<vmem>>, vector<1x128xf32>
    %127 = vector.broadcast %126 : vector<1x128xf32> to vector<2x128xf32>
    %128 = arith.addf %125, %127 : vector<2x128xf32>
    %cst_61 = arith.constant 0.000000e+00 : f32
    %129 = vector.broadcast %cst_61 : f32 to vector<2x128xf32>
    %130 = arith.maximumf %128, %129 : vector<2x128xf32>
    %c0_62 = arith.constant 0 : index
    %c0_63 = arith.constant 0 : index
    %131 = vector.load %arg14[%c0_62, %c0_63] : memref<128x128xf32, #tpu.memory_space<vmem>>, vector<128x128xf32>
    %cst_64 = arith.constant dense<0.000000e+00> : vector<2x128xf32>
    %132 = tpu.matmul %130, %131, %cst_64 {dimension_numbers = #tpu.dot_dimension_numbers<[1], [0], [0], [1], [0, 0, 1, 1], [], []>} : vector<2x128xf32>, vector<128x128xf32>, vector<2x128xf32> -> vector<2x128xf32>
    %c0_65 = arith.constant 0 : index
    %c0_66 = arith.constant 0 : index
    %133 = vector.load %arg15[%c0_65, %c0_66] : memref<1x128xf32, #tpu.memory_space<vmem>>, vector<1x128xf32>
    %134 = vector.broadcast %133 : vector<1x128xf32> to vector<2x128xf32>
    %135 = arith.addf %132, %134 : vector<2x128xf32>
    %c0_67 = arith.constant 0 : index
    %c0_68 = arith.constant 0 : index
    %136 = vector.load %arg16[%c0_67, %c0_68] : memref<2x128xf32, #tpu.memory_space<vmem>>, vector<2x128xf32>
    tpu.vector_store %arg16[%c0_67, %c0_68], %135 {strides = array<i32>} : memref<2x128xf32, #tpu.memory_space<vmem>>, vector<2x128xf32>,
    return
  }
  func.func @transform_0(%arg0: i32) -> (i32, i32) {
    %c0_i32 = arith.constant 0 : i32
    %c0_i32_0 = arith.constant 0 : i32
    return %arg0, %c0_i32 : i32, i32
  }
  func.func @transform_1(%arg0: i32) -> (i32, i32) {
    %c0_i32 = arith.constant 0 : i32
    %c0_i32_0 = arith.constant 0 : i32
    %c0_i32_1 = arith.constant 0 : i32
    return %c0_i32, %c0_i32_0 : i32, i32
  }
  func.func @transform_2(%arg0: i32) -> (i32, i32) {
    %c0_i32 = arith.constant 0 : i32
    %c0_i32_0 = arith.constant 0 : i32
    %c0_i32_1 = arith.constant 0 : i32
    return %c0_i32, %c0_i32_0 : i32, i32
  }
  func.func @transform_3(%arg0: i32) -> (i32, i32) {
    %c0_i32 = arith.constant 0 : i32
    %c0_i32_0 = arith.constant 0 : i32
    %c0_i32_1 = arith.constant 0 : i32
    return %c0_i32, %c0_i32_0 : i32, i32
  }
  func.func @transform_4(%arg0: i32) -> (i32, i32) {
    %c0_i32 = arith.constant 0 : i32
    %c0_i32_0 = arith.constant 0 : i32
    %c0_i32_1 = arith.constant 0 : i32
    return %c0_i32, %c0_i32_0 : i32, i32
  }
  func.func @transform_5(%arg0: i32) -> (i32, i32) {
    %c0_i32 = arith.constant 0 : i32
    %c0_i32_0 = arith.constant 0 : i32
    %c0_i32_1 = arith.constant 0 : i32
    return %c0_i32, %c0_i32_0 : i32, i32
  }
  func.func @transform_6(%arg0: i32) -> (i32, i32) {
    %c0_i32 = arith.constant 0 : i32
    %c0_i32_0 = arith.constant 0 : i32
    %c0_i32_1 = arith.constant 0 : i32
    return %c0_i32, %c0_i32_0 : i32, i32
  }
  func.func @transform_7(%arg0: i32) -> (i32, i32) {
    %c0_i32 = arith.constant 0 : i32
    %c0_i32_0 = arith.constant 0 : i32
    %c0_i32_1 = arith.constant 0 : i32
    return %c0_i32, %c0_i32_0 : i32, i32
  }
  func.func @transform_8(%arg0: i32) -> (i32, i32) {
    %c0_i32 = arith.constant 0 : i32
    %c0_i32_0 = arith.constant 0 : i32
    %c0_i32_1 = arith.constant 0 : i32
    return %c0_i32, %c0_i32_0 : i32, i32
  }
  func.func @transform_9(%arg0: i32) -> (i32, i32) {
    %c0_i32 = arith.constant 0 : i32
    %c0_i32_0 = arith.constant 0 : i32
    %c0_i32_1 = arith.constant 0 : i32
    return %c0_i32, %c0_i32_0 : i32, i32
  }
  func.func @transform_10(%arg0: i32) -> (i32, i32) {
    %c0_i32 = arith.constant 0 : i32
    %c0_i32_0 = arith.constant 0 : i32
    %c0_i32_1 = arith.constant 0 : i32
    return %c0_i32, %c0_i32_0 : i32, i32
  }
  func.func @transform_11(%arg0: i32) -> (i32, i32) {
    %c0_i32 = arith.constant 0 : i32
    %c0_i32_0 = arith.constant 0 : i32
    %c0_i32_1 = arith.constant 0 : i32
    return %c0_i32, %c0_i32_0 : i32, i32
  }
  func.func @transform_12(%arg0: i32) -> (i32, i32) {
    %c0_i32 = arith.constant 0 : i32
    %c0_i32_0 = arith.constant 0 : i32
    %c0_i32_1 = arith.constant 0 : i32
    return %c0_i32, %c0_i32_0 : i32, i32
  }
  func.func @transform_13(%arg0: i32) -> (i32, i32) {
    %c0_i32 = arith.constant 0 : i32
    %c0_i32_0 = arith.constant 0 : i32
    %c0_i32_1 = arith.constant 0 : i32
    return %c0_i32, %c0_i32_0 : i32, i32
  }
  func.func @transform_14(%arg0: i32) -> (i32, i32) {
    %c0_i32 = arith.constant 0 : i32
    %c0_i32_0 = arith.constant 0 : i32
    %c0_i32_1 = arith.constant 0 : i32
    return %c0_i32, %c0_i32_0 : i32, i32
  }
  func.func @transform_15(%arg0: i32) -> (i32, i32) {
    %c0_i32 = arith.constant 0 : i32
    %c0_i32_0 = arith.constant 0 : i32
    return %arg0, %c0_i32 : i32, i32
  }
}

</mosaic_0001>

<bundles_post_ra>
// kernel: tpu_custom_call.1
= control target key start
LH: loop header
LB: loop body
LE: loop exit
PB: predicated region body
PF: predicated region fallthrough
CT: control target
= control target key end

     0   :  { %20 = vsyncpa [#allocation3], 0  ;;  %s3059_s0 = inlined_call_operand.hbm [shape: bf16[32,128], index: 0, kind: input, shape index: {}]   ;;  %s3060_s1 = inlined_call_operand.hbm [shape: bf16[384,128], index: 1, kind: input, shape index: {}]   ;;  %s3061_s2 = inlined_call_operand.vmem [shape: f32[1,128], index: 2, kind: input, shape index: {}]   ;;  %s3062_s3 = inlined_call_operand.hbm [shape: bf16[384,128], index: 3, kind: input, shape index: {}]   ;;  %s3063_s4 = inlined_call_operand.hbm [shape: f32[1,128], index: 4, kind: input, shape index: {}]   ;;  %s3064_s5 = inlined_call_operand.hbm [shape: bf16[384,128], index: 5, kind: input, shape index: {}]   ;;  %s3065_s6 = inlined_call_operand.vmem [shape: f32[1,128], index: 6, kind: input, shape index: {}]   ;;  %s3066_s7 = inlined_call_operand.hbm [shape: bf16[384,256], index: 7, kind: input, shape index: {}]   ;;  %s3067_s8 = inlined_call_operand.vmem [shape: f32[1,256], index: 8, kind: input, shape index: {}]   ;;  %s3068_s9 = inlined_call_operand.hbm [shape: f32[256,128], index: 9, kind: input, shape index: {}]   ;;  %s3069_s10 = inlined_call_operand.vmem [shape: f32[1,128], index: 10, kind: input, shape index: {}]   ;;  %s3070_s11 = inlined_call_operand.hbm [shape: f32[128,128], index: 11, kind: input, shape index: {}]   ;;  %s3071_s12 = inlined_call_operand.vmem [shape: f32[1,128], index: 12, kind: input, shape index: {}]   ;;  %s3072_s13 = inlined_call_operand.hbm [shape: f32[128,128], index: 13, kind: input, shape index: {}]   ;;  %s3073_s14 = inlined_call_operand.vmem [shape: f32[1,128], index: 14, kind: input, shape index: {}]   ;;  %s3074_s15 = inlined_call_operand.hbm [shape: f32[2,128], index: 15, kind: output, shape index: {}]  }
   0x1   :  { %21 = vsyncpa [#allocation6], 0 }
   0x2   :  { %22 = vsyncpa [#allocation9], 0 }
   0x3   :  { %23 = vsyncpa [#allocation12], 0 }
   0x4   :  { %24 = vsyncpa [#allocation15], 0 }
   0x5   :  { %25 = vsyncpa [#allocation4], 0  ;;  %s43_s20 = sshll.u32 %s3060_s1, 4  ;;  %s2738_s21 = smov [#allocation5]   ;;  %s44_s20 = int_to_ptr.hbm [resolvable:$true] %s43_s20 }
   0x6   :  { %s45_s22 = sshll.u32 %s2738_s21, 4  ;;  %s72_s25 = sshll.u32 %s3063_s4, 4  ;;  %s46_s22 = int_to_ptr.vmem [resolvable:$true] %s45_s22  ;;  %s73_s25 = int_to_ptr.hbm [resolvable:$true] %s72_s25 }
   0x7   :  { %s2739_s26 = smov 64   ;;  %s2740_s27 = smov 4  }
   0x8   :  { %51 = dma.hbm_to_vmem [thread:$0]  %s44_s20, 3072, %s46_s22, [#allocation6], %s2739_s26, %s2739_s26, %s2740_s27  }
   0x9   :  { %s2741_s28 = smov [#allocation8]   ;;  %s97_s1 = sshll.u32 %s3066_s7, 4  ;;  %s98_s1 = int_to_ptr.hbm [resolvable:$true] %s97_s1 }
   0xa   :  { %s74_s29 = sshll.u32 %s2741_s28, 4  ;;  %s2742_s17 = smov [#allocation11]   ;;  %s75_s29 = int_to_ptr.vmem [resolvable:$true] %s74_s29 }
   0xb   :  { %77 = dma.hbm_to_vmem [thread:$0]  %s73_s25, 16, %s75_s29, [#allocation9]  }
   0xc   :  { %s99_s18 = sshll.u32 %s2742_s17, 4  ;;  %s127_s21 = sshll.u32 %s3070_s11, 4  ;;  %s100_s18 = int_to_ptr.vmem [resolvable:$true] %s99_s18  ;;  %s128_s21 = int_to_ptr.hbm [resolvable:$true] %s127_s21 }
   0xd   :  { %s2743_s23 = smov 128   ;;  %s2744_s24 = smov 8  }
   0xe   :  { %105 = dma.hbm_to_vmem [thread:$0]  %s98_s1, 6144, %s100_s18, [#allocation12], %s2743_s23, %s2743_s23, %s2744_s24  }
   0xf   :  { %s2745_s20 = smov [#allocation14]   ;;  %s30_s25 = sshll.u32 %s3059_s0, 4  ;;  %s31_s25 = int_to_ptr.hbm [resolvable:$true] %s30_s25 }
  0x10   :  { %s129_s22 = sshll.u32 %s2745_s20, 4  ;;  %s58_s30 = sshll.u32 %s3062_s3, 4  ;;  %s130_s22 = int_to_ptr.vmem [resolvable:$true] %s129_s22  ;;  %s59_s30 = int_to_ptr.hbm [resolvable:$true] %s58_s30 }
  0x11   :  { %135 = dma.hbm_to_vmem [thread:$0]  %s128_s21, 2048, %s130_s22, [#allocation15], %s2743_s23, %s2743_s23, %s2744_s24  }
  0x12   :  { %s2746_s16 = smov [#allocation2]   ;;  %s2747_s1 = smov [#allocation7]  }
  0x13   :  { %s32_s17 = sshll.u32 %s2746_s16, 4  ;;  %s60_s0 = sshll.u32 %s2747_s1, 4  ;;  %s33_s17 = int_to_ptr.vmem [resolvable:$true] %s32_s17  ;;  %s61_s0 = int_to_ptr.vmem [resolvable:$true] %s60_s0 }
  0x14   :  { %38 = dma.hbm_to_vmem [thread:$0]  %s31_s25, 256, %s33_s17, [#allocation3], %s2739_s26, %s2739_s26, %s2740_s27  }
  0x15   :  { %s82_s19 = sshll.u32 %s3064_s5, 4  ;;  %s112_s20 = sshll.u32 %s3068_s9, 4  ;;  %s83_s19 = int_to_ptr.hbm [resolvable:$true] %s82_s19  ;;  %s113_s20 = int_to_ptr.hbm [resolvable:$true] %s112_s20 }
  0x16   :  { %66 = dma.hbm_to_vmem [thread:$0]  %s59_s30, 3072, %s61_s0, [#allocation6], %s2739_s26, %s2739_s26, %s2740_s27  }
  0x17   :  { %s2748_s22 = smov [#allocation10]   ;;  %s2749_s28 = smov [#allocation13]  }
  0x18   :  { %s84_s7 = sshll.u32 %s2748_s22, 4  ;;  %s114_s5 = sshll.u32 %s2749_s28, 4  ;;  %s85_s7 = int_to_ptr.vmem [resolvable:$true] %s84_s7  ;;  %s115_s5 = int_to_ptr.vmem [resolvable:$true] %s114_s5 }
  0x19   :  { %90 = dma.hbm_to_vmem [thread:$0]  %s83_s19, 3072, %s85_s7, [#allocation9], %s2739_s26, %s2739_s26, %s2740_s27  }
  0x1a   :  { %s142_s29 = sshll.u32 %s3072_s13, 4  ;;  %s2750_s9 = smov [#allocation16]   ;;  %s143_s29 = int_to_ptr.hbm [resolvable:$true] %s142_s29 }
  0x1b   :  { %120 = dma.hbm_to_vmem [thread:$0]  %s113_s20, 4096, %s115_s5, [#allocation12], %s2743_s23, %s2743_s23, %s2744_s24  }
  0x1c   :  { %s144_s30 = sshll.u32 %s2750_s9, 4  ;;  %s145_s30 = int_to_ptr.vmem [resolvable:$true] %s144_s30 }
  0x1d   :  { %150 = dma.hbm_to_vmem [thread:$0]  %s143_s29, 2048, %s145_s30, [#allocation15], %s2743_s23, %s2743_s23, %s2744_s24  }
  0x1e   :  { %2726 = dma.done.wait [#allocation3], 256  }
  0x1f   :  { %2727 = vsyncadd [#allocation3], 4294967040 }
  0x20   :  { %2728 = dma.done.wait [#allocation6], 6144  }
  0x21   :  { %2729 = vsyncadd [#allocation6], 4294961152 }
  0x22   :  { %2730 = dma.done.wait [#allocation9], 3088  }
  0x23   :  { %2731 = vsyncadd [#allocation9], 4294964208 }
  0x24   :  { %2732 = dma.done.wait [#allocation12], 10240  }
  0x25   :  { %2733 = vsyncadd [#allocation12], 4294957056 }
  0x26   :  { %2734 = dma.done.wait [#allocation15], 4096  }
  0x27   :  { %2735 = vsyncadd [#allocation15], 4294963200  ;;  %v2343_v0 = vld [vmem:[#allocation5 + $0x38] sm:$0xff]  ;;  %v2342_v3 = vld [vmem:[#allocation5 + $0x30] sm:$0xff]  ;;  %v189_v12 = vlaneseq  ;;  %vm2751_vm4 = vmmov 1   ;;  %vm1647_vm11 = vcmask 1041409  }
  0x28   :  { %v2351_v1 = vld [vmem:[#allocation5 + $0x78] sm:$0xff]  ;;  %502 = vmatpush.bf16.msra.mxu0 %v2343_v0  ;;  %v2350_v4 = vld [vmem:[#allocation5 + $0x70] sm:$0xff]  ;;  %v2341_v6 = vld [vmem:[#allocation5 + $0x28] sm:$0xff]  ;;  %s2752_s0 = smov [#allocation17]   ;;  %s1782_s3 = sshll.u32 %s3074_s15, 4  ;;  %s1783_s3 = int_to_ptr.hbm [resolvable:$true] %s1782_s3 }
  0x29   :  { %v2359_v2 = vld [vmem:[#allocation5 + $0xb8] sm:$0xff]  ;;  %521 = vmatpush.bf16.msra.mxu1 %v2351_v1  ;;  %v2358_v5 = vld [vmem:[#allocation5 + $0xb0] sm:$0xff]  ;;  %v2349_v7 = vld [vmem:[#allocation5 + $0x68] sm:$0xff]  ;;  %v2886_v18 = vshrl.u32 %v189_v12, 7  ;;  %s1780_s18 = sshll.u32 %s2752_s0, 4  ;;  %s1781_s18 = int_to_ptr.vmem [resolvable:$true] %s1780_s18 }
  0x2a   :  { %540 = vmatpush.bf16.msra.mxu2 %v2359_v2  ;;  %v2357_v8 = vld [vmem:[#allocation5 + $0xa8] sm:$0xff]  ;;  %v2340_v9 = vld [vmem:[#allocation5 + $0x20] sm:$0xff]  ;;  %v2339_v13 = vld [vmem:[#allocation5 + $0x18] sm:$0xff] }
  0x2b   :  { %v2348_v10 = vld [vmem:[#allocation5 + $0x60] sm:$0xff]  ;;  %v2347_v14 = vld [vmem:[#allocation5 + $0x58] sm:$0xff]  ;;  %v2457_v16 = vld [vmem:[#allocation2] sm:$0xff]   ;;  %v191_v26 = vadd.s32 8, %v2886_v18  ;;  %v198_v29 = vand.u32 15, %v2886_v18  ;;  %vm262_vm0 = vcmp.lt.s32.totalorder %v2886_v18, 1 }
  0x2c   :  { %503 = vmatpush.bf16.msra.mxu0 %v2342_v3  ;;  %v2356_v11 = vld [vmem:[#allocation5 + $0xa0] sm:$0xff]  ;;  %v2355_v15 = vld [vmem:[#allocation5 + $0x98] sm:$0xff]  ;;  %v2338_v19 = vld [vmem:[#allocation5 + $0x10] sm:$0xff]  ;;  %v2458_v21 = vunpack.c.l.bf16 %v2457_v16  ;;  %v2459_v22 = vunpack.c.h.bf16 %v2457_v16  ;;  %vm283_vm1 = vcmp.lt.s32.totalorder %v2886_v18, 7  ;;  %v192_v51 = vadd.s32 16, %v2886_v18 }
  0x2d   :  { %522 = vmatpush.bf16.msra.mxu1 %v2350_v4  ;;  %v2884_v17 = vld [vmem:[#allocation2 + $0x8] sm:$0xff]   ;;  %v2346_v20 = vld [vmem:[#allocation5 + $0x50] sm:$0xff]  ;;  %v2337_v27 = vld [vmem:[#allocation5 + $0x8] sm:$0xff]  ;;  %v205_v37 = vand.u32 15, %v191_v26  ;;  %vm242_vm2 = vcmp.ne.s32.totalorder %v198_v29, 0  ;;  %v193_v53 = vadd.s32 24, %v2886_v18 }
  0x2e   :  { %541 = vmatpush.bf16.msra.mxu2 %v2358_v5  ;;  %v2463_v23 = vunpack.c.h.bf16 %v2884_v17  ;;  %v2354_v24 = vld [vmem:[#allocation5 + $0x90] sm:$0xff]  ;;  %v2462_v25 = vunpack.c.l.bf16 %v2884_v17  ;;  %v2345_v28 = vld [vmem:[#allocation5 + $0x48] sm:$0xff]  ;;  %v258_v30 = vrot.slane %v2458_v21, 7  ;;  %v259_v31 = vrot.slane %v2459_v22, 7  ;;  %v2336_v38 = vld [vmem:[#allocation5] sm:$0xff] }
  0x2f   :  { %v2353_v33 = vld [vmem:[#allocation5 + $0x88] sm:$0xff]  ;;  %v279_v34 = vrot.slane %v2458_v21, 1  ;;  %v280_v35 = vrot.slane %v2459_v22, 1  ;;  %v2344_v39 = vld [vmem:[#allocation5 + $0x40] sm:$0xff]  ;;  %v2375_v45 = vld [vmem:[#allocation7 + $0x78] sm:$0xff]  ;;  %vm247_vm3 = vcmp.ne.s32.totalorder %v205_v37, 15 }
  0x30   :  { %504 = vmatpush.bf16.msra.mxu0 %v2341_v6  ;;  %v261_v32 = vrot.slane %v2463_v23, 7  ;;  %v281_v36 = vrot.slane %v2462_v25, 1  ;;  %v265_v40 = vsel %vm262_vm0, %v258_v30, %v259_v31  ;;  %v2352_v42 = vld [vmem:[#allocation5 + $0x80] sm:$0xff]  ;;  %vm2903_vm5 = vmpackc.low %vm2751_vm4, %vm242_vm2  ;;  %v2374_v50 = vld [vmem:[#allocation7 + $0x70] sm:$0xff]  ;;  %v260_v54 = vrot.slane %v2462_v25, 7 }
  0x31   :  { %523 = vmatpush.bf16.msra.mxu1 %v2349_v7  ;;  %v286_v44 = vsel %vm283_vm1, %v279_v34, %v280_v35  ;;  %vm2908_vm6 = vmpackc.low %vm247_vm3, %vm2751_vm4  ;;  %v2373_v52 = vld [vmem:[#allocation7 + $0x68] sm:$0xff]  ;;  %v212_v55 = vand.u32 15, %v192_v51  ;;  %v282_v56 = vrot.slane %v2463_v23, 1  ;;  %v219_v57 = vand.u32 15, %v193_v53  ;;  %v2383_v2 = vld [vmem:[#allocation7 + $0xb8] sm:$0xff] }
  0x32   :  { %542 = vmatpush.bf16.msra.mxu2 %v2357_v8  ;;  %v266_v41 = vsel %vm262_vm0, %v261_v32, %v258_v30  ;;  %v285_v43 = vsel %vm283_vm1, %v280_v35, %v281_v36  ;;  %v263_v58 = vsel %vm262_vm0, %v260_v54, %v261_v32  ;;  %v264_v59 = vsel %vm262_vm0, %v259_v31, %v260_v54  ;;  %v2372_v3 = vld [vmem:[#allocation7 + $0x60] sm:$0xff]  ;;  %v2382_v4 = vld [vmem:[#allocation7 + $0xb0] sm:$0xff]  ;;  %v2371_v5 = vld [vmem:[#allocation7 + $0x58] sm:$0xff] }
  0x33   :  { %v1893_v46 = vpack.c.bf16 %v265_v40, %v266_v41  ;;  %v1899_v48 = vpack.c.bf16 %v285_v43, %v286_v44  ;;  %vm244_vm7 = vcmp.ne.s32.totalorder %v212_v55, 0  ;;  %v284_v60 = vsel %vm283_vm1, %v281_v36, %v282_v56  ;;  %v2367_v6 = vld [vmem:[#allocation7 + $0x38] sm:$0xff]  ;;  %v2381_v7 = vld [vmem:[#allocation7 + $0xa8] sm:$0xff]  ;;  %v2370_v8 = vld [vmem:[#allocation7 + $0x50] sm:$0xff] }
  0x34   :  { %505 = vmatpush.bf16.msra.mxu0 %v2340_v9  ;;  %v287_v61 = vsel %vm283_vm1, %v282_v56, %v279_v34  ;;  %vm249_vm8 = vcmp.ne.s32.totalorder %v219_v57, 15  ;;  %v1896_v62 = vpack.c.bf16 %v263_v58, %v264_v59  ;;  %vm2927_vm9 = vmpackc.low %vm2751_vm4, %vm244_vm7  ;;  %789 = vmatpush.bf16.msra.mxu3 %v2367_v6  ;;  %v2366_v9 = vld [vmem:[#allocation7 + $0x30] sm:$0xff]  ;;  %v2365_v12 = vld [vmem:[#allocation7 + $0x28] sm:$0xff] }
  0x35   :  { %524 = vmatpush.bf16.msra.mxu1 %v2348_v10  ;;  %v1902_v0 = vpack.c.bf16 %v287_v61, %v284_v60  ;;  %vm2932_vm10 = vmpackc.low %vm249_vm8, %vm2751_vm4  ;;  %v2380_v10 = vld [vmem:[#allocation7 + $0xa0] sm:$0xff]  ;;  %v2480_v25 = vld [vmem:[%s3061_s2] ss:$0 sm:$0xff] }
  0x36   :  { %543 = vmatpush.bf16.msra.mxu2 %v2356_v11  ;;  %v2369_v11 = vld [vmem:[#allocation7 + $0x48] sm:$0xff]  ;;  %v2376_v21 = vld [vmem:[#allocation7 + $0x80] sm:$0xff] }
  0x37   :  { %v2360_v26 = vld [vmem:[#allocation7] sm:$0xff]  ;;  %v1616_v63 = vld [vmem:[#allocation13 + $0x48] sm:$0xff] }
  0x38   :  { %506 = vmatpush.bf16.msra.mxu0 %v2339_v13  ;;  %790 = vmatpush.bf16.msra.mxu3 %v2366_v9  ;;  %v2379_v13 = vld [vmem:[#allocation7 + $0x98] sm:$0xff]  ;;  %v1619_v18 = vld [vmem:[#allocation13 + $0x60] sm:$0xff] }
  0x39   :  { %525 = vmatpush.bf16.msra.mxu1 %v2347_v14  ;;  %v2368_v14 = vld [vmem:[#allocation7 + $0x40] sm:$0xff] }
  0x3a   :  { %544 = vmatpush.bf16.msra.mxu2 %v2355_v15  ;;  %v2364_v15 = vld [vmem:[#allocation7 + $0x20] sm:$0xff] }
  0x3c   :  { %507 = vmatpush.bf16.msra.mxu0 %v2338_v19  ;;  %791 = vmatpush.bf16.msra.mxu3 %v2365_v12  ;;  %v2377_v19 = vld [vmem:[#allocation7 + $0x88] sm:$0xff] }
  0x3d   :  { %526 = vmatpush.bf16.msra.mxu1 %v2346_v20  ;;  %v2362_v20 = vld [vmem:[#allocation7 + $0x10] sm:$0xff] }
  0x3e   :  { %545 = vmatpush.bf16.msra.mxu2 %v2354_v24  ;;  %v2361_v24 = vld [vmem:[#allocation7 + $0x8] sm:$0xff] }
  0x40   :  { %508 = vmatpush.bf16.msra.mxu0 %v2337_v27  ;;  %792 = vmatpush.bf16.msra.mxu3 %v2364_v15  ;;  %v2399_v15 = vld [vmem:[#allocation10 + $0x78] sm:$0xff] }
  0x41   :  { %527 = vmatpush.bf16.msra.mxu1 %v2345_v28 }
  0x42   :  { %546 = vmatpush.bf16.msra.mxu2 %v2353_v33 }
  0x44   :  { %509 = vmatpush.bf16.msra.mxu0 %v2336_v38 }
  0x45   :  { %528 = vmatpush.bf16.msra.mxu1 %v2344_v39 }
  0x46   :  { %547 = vmatpush.bf16.msra.mxu2 %v2352_v42 }
  0x47   :  { %1894 = vmatmul.msk.bf16.vlgmr.msra.gmra.mxu0 %vm2903_vm5, %v1893_v46 }
  0x48   :  { %808 = vmatpush.bf16.msrb.mxu0 %v2375_v45  ;;  %529 = vmatmul.bf16.vlgmr.msra.gmra.mxu1 %v2457_v16  ;;  %v2378_v16 = vld [vmem:[#allocation7 + $0x90] sm:$0xff] }
  0x49   :  { %1900 = vmatmul.msk.bf16.vlgmr.msra.gmra.mxu2 %vm2908_vm6, %v1899_v48  ;;  %827 = vmatpush.bf16.msrb.mxu1 %v2383_v2 }
  0x4c   :  { %809 = vmatpush.bf16.msrb.mxu0 %v2374_v50 }
  0x4d   :  { %828 = vmatpush.bf16.msrb.mxu1 %v2382_v4 }
  0x50   :  { %810 = vmatpush.bf16.msrb.mxu0 %v2373_v52 }
  0x51   :  { %829 = vmatpush.bf16.msrb.mxu1 %v2381_v7 }
  0x54   :  { %811 = vmatpush.bf16.msrb.mxu0 %v2372_v3 }
  0x55   :  { %830 = vmatpush.bf16.msrb.mxu1 %v2380_v10 }
  0x57   :  { %1897 = vmatmul.msk.bf16.gmra.mxu0 %vm2927_vm9, %v1896_v62 }
  0x58   :  { %534 = vmatmul.bf16.gmra.mxu1 %v2884_v17  ;;  %812 = vmatpush.bf16.msrb.mxu0 %v2371_v5  ;;  %v2363_v17 = vld [vmem:[#allocation7 + $0x18] sm:$0xff] }
  0x59   :  { %1903 = vmatmul.msk.bf16.gmra.mxu2 %vm2932_vm10, %v1902_v0  ;;  %831 = vmatpush.bf16.msrb.mxu1 %v2379_v13 }
  0x5a   :  { %793 = vmatpush.bf16.msra.mxu3 %v2363_v17  ;;  %v2397_v17 = vld [vmem:[#allocation10 + $0x68] sm:$0xff] }
  0x5c   :  { %813 = vmatpush.bf16.msrb.mxu0 %v2370_v8 }
  0x5d   :  { %832 = vmatpush.bf16.msrb.mxu1 %v2378_v16  ;;  %v2398_v16 = vld [vmem:[#allocation10 + $0x70] sm:$0xff] }
  0x5e   :  { %794 = vmatpush.bf16.msra.mxu3 %v2362_v20  ;;  %v2396_v20 = vld [vmem:[#allocation10 + $0x60] sm:$0xff] }
  0x60   :  { %814 = vmatpush.bf16.msrb.mxu0 %v2369_v11 }
  0x61   :  { %833 = vmatpush.bf16.msrb.mxu1 %v2377_v19  ;;  %v2407_v19 = vld [vmem:[#allocation10 + $0xb8] sm:$0xff] }
  0x62   :  { %795 = vmatpush.bf16.msra.mxu3 %v2361_v24  ;;  %v2405_v24 = vld [vmem:[#allocation10 + $0xa8] sm:$0xff] }
  0x64   :  { %815 = vmatpush.bf16.msrb.mxu0 %v2368_v14 }
  0x65   :  { %834 = vmatpush.bf16.msrb.mxu1 %v2376_v21  ;;  %v2406_v21 = vld [vmem:[#allocation10 + $0xb0] sm:$0xff] }
  0x66   :  { %796 = vmatpush.bf16.msra.mxu3 %v2360_v26  ;;  %v2390_v26 = vld [vmem:[#allocation10 + $0x30] sm:$0xff] }
  0x68   :  { %1114 = vmatpush.bf16.msra.mxu0 %v2407_v19 }
  0x6a   :  { %1095 = vmatpush.bf16.msrb.mxu3 %v2399_v15 }
  0x6c   :  { %1115 = vmatpush.bf16.msra.mxu0 %v2406_v21 }
  0x6e   :  { %1096 = vmatpush.bf16.msrb.mxu3 %v2398_v16 }
  0x70   :  { %1116 = vmatpush.bf16.msra.mxu0 %v2405_v24 }
  0x72   :  { %1097 = vmatpush.bf16.msrb.mxu3 %v2397_v17 }
  0x76   :  { %1098 = vmatpush.bf16.msrb.mxu3 %v2396_v20 }
  0xc4   :  { %v511_v22 = vpop.f32.mrf.mxu0 }
  0xc5   :  { %v530_v23 = vpop.f32.mrf.mxu1  ;;  %v512_v27 = vadd.f32 %v2480_v25, %v511_v22  ;;  %v2395_v22 = vld [vmem:[#allocation10 + $0x58] sm:$0xff] }
  0xc6   :  { %1099 = vmatpush.bf16.msrb.mxu3 %v2395_v22 }
  0xc7   :  { %v531_v31 = vadd.f32 %v530_v23, %v512_v27  ;;  %v2391_v23 = vld [vmem:[#allocation10 + $0x38] sm:$0xff]  ;;  %v2404_v27 = vld [vmem:[#allocation10 + $0xa0] sm:$0xff] }
  0xc8   :  { %1076 = vmatpush.bf16.msrb.mxu2 %v2391_v23  ;;  %1117 = vmatpush.bf16.msra.mxu0 %v2404_v27 }
  0xcc   :  { %v549_v28 = vpop.f32.mrf.mxu2  ;;  %v513_v29 = vpop.f32.mrf.mxu0  ;;  %1077 = vmatpush.bf16.msrb.mxu2 %v2390_v26 }
  0xcd   :  { %v532_v30 = vpop.f32.mrf.mxu1  ;;  %v514_v32 = vadd.f32 %v2480_v25, %v513_v29  ;;  %v550_v33 = vadd.f32 %v549_v28, %v531_v31  ;;  %v2393_v28 = vld [vmem:[#allocation10 + $0x48] sm:$0xff]  ;;  %v2392_v31 = vld [vmem:[#allocation10 + $0x40] sm:$0xff] }
  0xce   :  { %v2389_v29 = vld [vmem:[#allocation10 + $0x28] sm:$0xff] }
  0xcf   :  { %v533_v34 = vadd.f32 %v532_v30, %v514_v32  ;;  %v559_v39 = vmax.f32 %v550_v33, 0.0  ;;  %v2403_v30 = vld [vmem:[#allocation10 + $0x98] sm:$0xff]  ;;  %v2388_v32 = vld [vmem:[#allocation10 + $0x20] sm:$0xff]  ;;  %v2402_v33 = vld [vmem:[#allocation10 + $0x90] sm:$0xff] }
  0xd0   :  { %1078 = vmatpush.bf16.msrb.mxu2 %v2389_v29  ;;  %1118 = vmatpush.bf16.msra.mxu0 %v2403_v30 }
  0xd1   :  { %v575_v52 = vrot.slane %v559_v39, 1  ;;  %v563_v0 = vrot.slane %v559_v39, 7 }
  0xd4   :  { %v551_v35 = vpop.f32.mrf.mxu2  ;;  %v516_v37 = vpop.f32.mrf.mxu0  ;;  %1079 = vmatpush.bf16.msrb.mxu2 %v2388_v32  ;;  %1119 = vmatpush.bf16.msra.mxu0 %v2402_v33  ;;  %v2242_v32 = vld [vmem:[#allocation11 + $0xf0] sm:$0xf]  ;;  %v2439_v33 = vld [vmem:[#allocation11 + $0xf4] sm:$0xf0] }
  0xd5   :  { %v552_v36 = vadd.f32 %v551_v35, %v533_v34  ;;  %v517_v38 = vadd.f32 %v2480_v25, %v516_v37  ;;  %v535_v41 = vpop.f32.mrf.mxu1  ;;  %v2387_v34 = vld [vmem:[#allocation10 + $0x18] sm:$0xff]  ;;  %v2401_v35 = vld [vmem:[#allocation10 + $0x88] sm:$0xff]  ;;  %v2400_v37 = vld [vmem:[#allocation10 + $0x80] sm:$0xff] }
  0xd7   :  { %v560_v40 = vmax.f32 %v552_v36, 0.0  ;;  %v536_v42 = vadd.f32 %v535_v41, %v517_v38  ;;  %v2386_v36 = vld [vmem:[#allocation10 + $0x10] sm:$0xff]  ;;  %v2481_v41 = vld [vmem:[#allocation8] ss:$0 sm:$0xff] }
  0xd8   :  { %1080 = vmatpush.bf16.msrb.mxu2 %v2387_v34  ;;  %1120 = vmatpush.bf16.msra.mxu0 %v2401_v35  ;;  %v2243_v34 = vor.u32 %v2439_v33, %v2242_v32  ;;  %v2234_v35 = vld [vmem:[#allocation11 + $0xe0] sm:$0xf] }
  0xd9   :  { %v588_v43 = vpack.c.bf16 %v560_v40, %v559_v39  ;;  %v576_v48 = vrot.slane %v560_v40, 1  ;;  %v564_v61 = vrot.slane %v560_v40, 7  ;;  %v2385_v39 = vld [vmem:[#allocation10 + $0x8] sm:$0xff]  ;;  %v2266_v32 = vld [vmem:[#allocation11 + $0x120] sm:$0xf] }
  0xdb   :  { %816 = vmatmul.bf16.vlgmr.msrb.gmra.mxu0 %v588_v43  ;;  %v581_v57 = vsel %vm283_vm1, %v575_v52, %v576_v48  ;;  %v569_v4 = vsel %vm262_vm0, %v563_v0, %v564_v61  ;;  %v2384_v43 = vld [vmem:[#allocation10] sm:$0xff] }
  0xdc   :  { %v554_v44 = vpop.f32.mrf.mxu2  ;;  %v518_v46 = vpop.f32.mrf.mxu0  ;;  %1081 = vmatpush.bf16.msrb.mxu2 %v2386_v36  ;;  %1121 = vmatpush.bf16.msra.mxu0 %v2400_v37  ;;  %v2437_v36 = vld [vmem:[#allocation11 + $0xe4] sm:$0xf0] }
  0xdd   :  { %v555_v45 = vadd.f32 %v554_v44, %v536_v42  ;;  %v519_v51 = vadd.f32 %v2480_v25, %v518_v46  ;;  %v537_v54 = vpop.f32.mrf.mxu1  ;;  %v2394_v25 = vld [vmem:[#allocation10 + $0x50] sm:$0xff]  ;;  %v2235_v37 = vor.u32 %v2437_v36, %v2234_v35  ;;  %v2416_v35 = vld [vmem:[#allocation11 + $0x44] sm:$0xf]  ;;  %v2156_v36 = vld [vmem:[#allocation11 + $0x48] sm:$0xf0] }
  0xde   :  { %1100 = vmatpush.bf16.msrb.mxu3 %v2394_v25 }
  0xdf   :  { %v561_v50 = vmax.f32 %v555_v45, 0.0  ;;  %v538_v55 = vadd.f32 %v537_v54, %v519_v51 }
  0xe0   :  { %1082 = vmatpush.bf16.msrb.mxu2 %v2385_v39  ;;  %v2435_v39 = vld [vmem:[#allocation11 + $0xd4] sm:$0xf0] }
  0xe1   :  { %v577_v53 = vrot.slane %v561_v50, 1  ;;  %v565_v11 = vrot.slane %v561_v50, 7 }
  0xe2   :  { %1101 = vmatpush.bf16.msrb.mxu3 %v2393_v28 }
  0xe3   :  { %v580_v56 = vsel %vm283_vm1, %v576_v48, %v577_v53  ;;  %v568_v13 = vsel %vm262_vm0, %v564_v61, %v565_v11 }
  0xe4   :  { %v556_v58 = vpop.f32.mrf.mxu2  ;;  %v2007_v59 = vpack.c.bf16 %v580_v56, %v581_v57  ;;  %1083 = vmatpush.bf16.msrb.mxu2 %v2384_v43 }
  0xe5   :  { %v557_v60 = vadd.f32 %v556_v58, %v538_v55 }
  0xe6   :  { %2008 = vmatmul.msk.bf16.vlgmr.msrb.gmra.mxu1 %vm2908_vm6, %v2007_v59  ;;  %1102 = vmatpush.bf16.msrb.mxu3 %v2392_v31 }
  0xe7   :  { %v562_v62 = vmax.f32 %v557_v60, 0.0 }
  0xe8   :  { %1480 = vmatpush.bf16.msra.mxu2 %v2243_v34  ;;  %v2445_v34 = vld [vmem:[#allocation11 + $0x124] sm:$0xf0] }
  0xe9   :  { %v566_v2 = vrot.slane %v562_v62, 7  ;;  %v591_v3 = vpack.c.bf16 %v562_v62, %v561_v50  ;;  %v578_v7 = vrot.slane %v562_v62, 1 }
  0xeb   :  { %821 = vmatmul.bf16.gmra.mxu0 %v591_v3  ;;  %v570_v5 = vsel %vm262_vm0, %v566_v2, %v563_v0  ;;  %v579_v8 = vsel %vm283_vm1, %v577_v53, %v578_v7  ;;  %v582_v9 = vsel %vm283_vm1, %v578_v7, %v575_v52  ;;  %v567_v12 = vsel %vm262_vm0, %v565_v11, %v566_v2 }
  0xec   :  { %v2001_v6 = vpack.c.bf16 %v569_v4, %v570_v5  ;;  %v2010_v10 = vpack.c.bf16 %v582_v9, %v579_v8  ;;  %v2004_v14 = vpack.c.bf16 %v567_v12, %v568_v13  ;;  %1481 = vmatpush.bf16.msra.mxu2 %v2235_v37  ;;  %v2267_v37 = vor.u32 %v2445_v34, %v2266_v32  ;;  %v2268_v34 = vld [vmem:[#allocation11 + $0x128] sm:$0xf0] }
  0xee   :  { %2002 = vmatmul.msk.bf16.vlgmr.msra.gmra.mxu3 %vm2903_vm5, %v2001_v6 }
  0xf6   :  { %2011 = vmatmul.msk.bf16.gmra.mxu1 %vm2932_vm10, %v2010_v10 }
  0xfe   :  { %2005 = vmatmul.msk.bf16.gmra.mxu3 %vm2927_vm9, %v2004_v14 }
 0x158   :  { %v817_v38 = vpop.f32.mrf.mxu0 }
 0x160   :  { %v819_v45 = vpop.f32.mrf.mxu0 }
 0x163   :  { %v836_v40 = vpop.f32.mrf.mxu1 }
 0x168   :  { %v822_v57 = vpop.f32.mrf.mxu0 }
 0x16b   :  { %v838_v48 = vpop.f32.mrf.mxu1 }
 0x170   :  { %v824_v8 = vpop.f32.mrf.mxu0 }
 0x171   :  { %v798_v42 = vpop.f32.mrf.mxu3 }
 0x172   :  { %v799_v44 = vadd.f32 %v2481_v41, %v798_v42  ;;  %v2455_v42 = vld [vmem:[#allocation11 + $0x174] sm:$0xf0] }
 0x173   :  { %v841_v61 = vpop.f32.mrf.mxu1 }
 0x174   :  { %v818_v46 = vadd.f32 %v817_v38, %v799_v44  ;;  %v2226_v38 = vld [vmem:[#allocation11 + $0xd0] sm:$0xf]  ;;  %v2218_v44 = vld [vmem:[#allocation11 + $0xc0] sm:$0xf] }
 0x176   :  { %v837_v52 = vadd.f32 %v836_v40, %v818_v46  ;;  %v2227_v40 = vor.u32 %v2435_v39, %v2226_v38  ;;  %v2159_v38 = vor.u32 %v2416_v35, %v2156_v36  ;;  %v2454_v39 = vld [vmem:[#allocation11 + $0x174] sm:$0xf] }
 0x178   :  { %v846_v55 = vmax.f32 %v837_v52, 0.0  ;;  %1482 = vmatpush.bf16.msra.mxu2 %v2227_v40  ;;  %v2210_v52 = vld [vmem:[#allocation11 + $0xb0] sm:$0xf]  ;;  %v2308_v40 = vld [vmem:[#allocation11 + $0x178] sm:$0xf0] }
 0x179   :  { %v800_v50 = vpop.f32.mrf.mxu3 }
 0x17a   :  { %v801_v51 = vadd.f32 %v2481_v41, %v800_v50  ;;  %v862_v5 = vrot.slane %v846_v55, 1  ;;  %v850_v17 = vrot.slane %v846_v55, 7  ;;  %v2453_v50 = vld [vmem:[#allocation11 + $0x164] sm:$0xf0] }
 0x17b   :  { %v843_v12 = vpop.f32.mrf.mxu1 }
 0x17c   :  { %v820_v53 = vadd.f32 %v819_v45, %v801_v51  ;;  %v2433_v45 = vld [vmem:[#allocation11 + $0xc4] sm:$0xf0] }
 0x17d   :  { %v2219_v46 = vor.u32 %v2433_v45, %v2218_v44  ;;  %v2258_v44 = vld [vmem:[#allocation11 + $0x110] sm:$0xf] }
 0x17e   :  { %v839_v54 = vadd.f32 %v838_v48, %v820_v53  ;;  %v2298_v48 = vld [vmem:[#allocation11 + $0x160] sm:$0xf]  ;;  %v2431_v53 = vld [vmem:[#allocation11 + $0xb4] sm:$0xf0] }
 0x17f   :  { %1483 = vmatpush.bf16.msra.mxu2 %v2219_v46  ;;  %v2299_v51 = vor.u32 %v2453_v50, %v2298_v48  ;;  %v2443_v46 = vld [vmem:[#allocation11 + $0x114] sm:$0xf0]  ;;  %v2414_v48 = vld [vmem:[#allocation11 + $0x34] sm:$0xf]  ;;  %v2148_v50 = vld [vmem:[#allocation11 + $0x38] sm:$0xf0] }
 0x180   :  { %v847_v56 = vmax.f32 %v839_v54, 0.0  ;;  %v2211_v54 = vor.u32 %v2431_v53, %v2210_v52  ;;  %v2151_v52 = vor.u32 %v2414_v48, %v2148_v50  ;;  %v2452_v53 = vld [vmem:[#allocation11 + $0x164] sm:$0xf] }
 0x181   :  { %v803_v58 = vpop.f32.mrf.mxu3 }
 0x182   :  { %v804_v59 = vadd.f32 %v2481_v41, %v803_v58  ;;  %v875_v60 = vpack.c.bf16 %v847_v56, %v846_v55  ;;  %v863_v2 = vrot.slane %v847_v56, 1  ;;  %v851_v15 = vrot.slane %v847_v56, 7  ;;  %v2178_v55 = vld [vmem:[#allocation11 + $0x70] sm:$0xf]  ;;  %v2423_v56 = vld [vmem:[#allocation11 + $0x74] sm:$0xf0] }
 0x183   :  { %1484 = vmatpush.bf16.msra.mxu2 %v2211_v54  ;;  %v2179_v58 = vor.u32 %v2423_v56, %v2178_v55  ;;  %v2300_v54 = vld [vmem:[#allocation11 + $0x168] sm:$0xf0]  ;;  %v2138_v56 = vld [vmem:[#allocation11 + $0x20] sm:$0xf] }
 0x184   :  { %v823_v62 = vadd.f32 %v822_v57, %v804_v59  ;;  %1103 = vmatmul.bf16.vlgmr.msrb.gmra.mxu3 %v875_v60  ;;  %v868_v11 = vsel %vm283_vm1, %v862_v5, %v863_v2  ;;  %v856_v21 = vsel %vm262_vm0, %v850_v17, %v851_v15  ;;  %v2290_v57 = vld [vmem:[#allocation11 + $0x150] sm:$0xf]  ;;  %v2451_v59 = vld [vmem:[#allocation11 + $0x154] sm:$0xf0]  ;;  %v2422_v60 = vld [vmem:[#allocation11 + $0x74] sm:$0xf]  ;;  %v2303_v55 = vor.u32 %v2452_v53, %v2300_v54 }
 0x185   :  { %1461 = vmatpush.bf16.msra.mxu1 %v2179_v58  ;;  %v2250_v58 = vld [vmem:[#allocation11 + $0x100] sm:$0xf] }
 0x186   :  { %v842_v0 = vadd.f32 %v841_v61, %v823_v62  ;;  %v2180_v61 = vld [vmem:[#allocation11 + $0x78] sm:$0xf0]  ;;  %v2291_v62 = vor.u32 %v2451_v59, %v2290_v57  ;;  %v2413_v57 = vld [vmem:[#allocation11 + $0x24] sm:$0xf0] }
 0x187   :  { %v2139_v59 = vor.u32 %v2413_v57, %v2138_v56  ;;  %v2252_v56 = vld [vmem:[#allocation11 + $0x108] sm:$0xf0] }
 0x188   :  { %v848_v3 = vmax.f32 %v842_v0, 0.0  ;;  %v2183_v0 = vor.u32 %v2422_v60, %v2180_v61  ;;  %v2441_v60 = vld [vmem:[#allocation11 + $0x104] sm:$0xf0]  ;;  %v2412_v61 = vld [vmem:[#allocation11 + $0x24] sm:$0xf] }
 0x189   :  { %v805_v4 = vpop.f32.mrf.mxu3 }
 0x18a   :  { %v864_v6 = vrot.slane %v848_v3, 1  ;;  %v806_v7 = vadd.f32 %v2481_v41, %v805_v4  ;;  %v852_v28 = vrot.slane %v848_v3, 7  ;;  %v2306_v41 = vld [vmem:[#allocation11 + $0x170] sm:$0xf]  ;;  %1518 = vmatpush.bf16.msrb.mxu0 %v2183_v0  ;;  %v2251_v0 = vor.u32 %v2441_v60, %v2250_v58  ;;  %v2432_v58 = vld [vmem:[#allocation11 + $0xc4] sm:$0xf] }
 0x18b   :  { %v2307_v43 = vor.u32 %v2455_v42, %v2306_v41  ;;  %v2311_v41 = vor.u32 %v2454_v39, %v2308_v40  ;;  %v2146_v42 = vld [vmem:[#allocation11 + $0x30] sm:$0xf]  ;;  %v2442_v39 = vld [vmem:[#allocation11 + $0x114] sm:$0xf] }
 0x18c   :  { %v825_v9 = vadd.f32 %v824_v8, %v806_v7  ;;  %v867_v10 = vsel %vm283_vm1, %v863_v2, %v864_v6  ;;  %v855_v30 = vsel %vm262_vm0, %v851_v15, %v852_v28  ;;  %v2202_v2 = vld [vmem:[#allocation11 + $0xa0] sm:$0xf]  ;;  %v2427_v15 = vld [vmem:[#allocation11 + $0x94] sm:$0xf0] }
 0x18d   :  { %v2115_v13 = vpack.c.bf16 %v867_v10, %v868_v11  ;;  %1499 = vmatpush.bf16.msra.mxu3 %v2307_v43  ;;  %v2282_v7 = vld [vmem:[#allocation11 + $0x140] sm:$0xf]  ;;  %v2420_v10 = vld [vmem:[#allocation11 + $0x64] sm:$0xf]  ;;  %v2172_v11 = vld [vmem:[#allocation11 + $0x68] sm:$0xf0] }
 0x18e   :  { %v844_v14 = vadd.f32 %v843_v12, %v825_v9  ;;  %v2449_v9 = vld [vmem:[#allocation11 + $0x144] sm:$0xf0]  ;;  %v2415_v43 = vld [vmem:[#allocation11 + $0x34] sm:$0xf0] }
 0x18f   :  { %2116 = vmatmul.msk.bf16.vlgmr.msra.gmra.mxu0 %vm2908_vm6, %v2115_v13  ;;  %v2283_v12 = vor.u32 %v2449_v9, %v2282_v7  ;;  %v2175_v13 = vor.u32 %v2420_v10, %v2172_v11  ;;  %v2147_v45 = vor.u32 %v2415_v43, %v2146_v42  ;;  %v2130_v7 = vld [vmem:[#allocation11 + $0x10] sm:$0xf]  ;;  %v2410_v9 = vld [vmem:[#allocation11 + $0x14] sm:$0xf]  ;;  %v2132_v11 = vld [vmem:[#allocation11 + $0x18] sm:$0xf0] }
 0x190   :  { %v849_v16 = vmax.f32 %v844_v14, 0.0  ;;  %v2194_v14 = vld [vmem:[#allocation11 + $0x90] sm:$0xf]  ;;  %v2260_v42 = vld [vmem:[#allocation11 + $0x118] sm:$0xf0] }
 0x191   :  { %1500 = vmatpush.bf16.msra.mxu3 %v2299_v51  ;;  %1519 = vmatpush.bf16.msrb.mxu0 %v2175_v13  ;;  %v2259_v51 = vor.u32 %v2443_v46, %v2258_v44  ;;  %v2284_v13 = vld [vmem:[#allocation11 + $0x148] sm:$0xf0]  ;;  %v2263_v46 = vor.u32 %v2442_v39, %v2260_v42 }
 0x192   :  { %v853_v19 = vrot.slane %v849_v16, 7  ;;  %v878_v20 = vpack.c.bf16 %v849_v16, %v848_v3  ;;  %v865_v24 = vrot.slane %v849_v16, 1  ;;  %v2429_v3 = vld [vmem:[#allocation11 + $0xa4] sm:$0xf0]  ;;  %v2195_v16 = vor.u32 %v2427_v15, %v2194_v14 }
 0x193   :  { %v2203_v4 = vor.u32 %v2429_v3, %v2202_v2  ;;  %v2450_v3 = vld [vmem:[#allocation11 + $0x154] sm:$0xf]  ;;  %v2135_v15 = vor.u32 %v2410_v9, %v2132_v11  ;;  %v2428_v11 = vld [vmem:[#allocation11 + $0xa4] sm:$0xf] }
 0x194   :  { %1108 = vmatmul.bf16.gmra.mxu3 %v878_v20  ;;  %v857_v22 = vsel %vm262_vm0, %v853_v19, %v850_v17  ;;  %v866_v25 = vsel %vm283_vm1, %v864_v6, %v865_v24  ;;  %v869_v26 = vsel %vm283_vm1, %v865_v24, %v862_v5  ;;  %v854_v29 = vsel %vm262_vm0, %v852_v28, %v853_v19  ;;  %v2170_v5 = vld [vmem:[#allocation11 + $0x60] sm:$0xf]  ;;  %v2421_v6 = vld [vmem:[#allocation11 + $0x64] sm:$0xf0]  ;;  %v2162_v17 = vld [vmem:[#allocation11 + $0x50] sm:$0xf] }
 0x195   :  { %v2109_v23 = vpack.c.bf16 %v856_v21, %v857_v22  ;;  %v2118_v27 = vpack.c.bf16 %v869_v26, %v866_v25  ;;  %v2112_v31 = vpack.c.bf16 %v854_v29, %v855_v30  ;;  %1501 = vmatpush.bf16.msra.mxu3 %v2291_v62  ;;  %1485 = vmatpush.bf16.msra.mxu2 %v2203_v4  ;;  %v2419_v19 = vld [vmem:[#allocation11 + $0x54] sm:$0xf0]  ;;  %v2274_v20 = vld [vmem:[#allocation11 + $0x130] sm:$0xf]  ;;  %v2164_v24 = vld [vmem:[#allocation11 + $0x58] sm:$0xf0] }
 0x196   :  { %v2171_v8 = vor.u32 %v2421_v6, %v2170_v5  ;;  %v2163_v21 = vor.u32 %v2419_v19, %v2162_v17  ;;  %v2447_v22 = vld [vmem:[#allocation11 + $0x134] sm:$0xf0]  ;;  %v2425_v28 = vld [vmem:[#allocation11 + $0x84] sm:$0xf0]  ;;  %v2154_v30 = vld [vmem:[#allocation11 + $0x40] sm:$0xf] }
 0x197   :  { %2110 = vmatmul.msk.bf16.vlgmr.msrb.gmra.mxu2 %vm2903_vm5, %v2109_v23  ;;  %v2418_v23 = vld [vmem:[#allocation11 + $0x54] sm:$0xf]  ;;  %v2275_v25 = vor.u32 %v2447_v22, %v2274_v20  ;;  %v2140_v62 = vld [vmem:[#allocation11 + $0x28] sm:$0xf0]  ;;  %v2292_v4 = vld [vmem:[#allocation11 + $0x158] sm:$0xf0] }
 0x198   :  { %1462 = vmatpush.bf16.msra.mxu1 %v2171_v8  ;;  %v2167_v26 = vor.u32 %v2418_v23, %v2164_v24  ;;  %v2143_v2 = vor.u32 %v2412_v61, %v2140_v62  ;;  %v2295_v5 = vor.u32 %v2450_v3, %v2292_v4  ;;  %v2411_v8 = vld [vmem:[#allocation11 + $0x14] sm:$0xf0]  ;;  %v2995_v17 = vld [vmem:[%s3065_s6] ss:$0 sm:$0xff]  ;;  %v2122_v20 = vld [vmem:[#allocation11] sm:$0xf] }
 0x199   :  { %1502 = vmatpush.bf16.msra.mxu3 %v2283_v12  ;;  %1486 = vmatpush.bf16.msra.mxu2 %v2195_v16  ;;  %v2131_v10 = vor.u32 %v2411_v8, %v2130_v7  ;;  %v2448_v12 = vld [vmem:[#allocation11 + $0x144] sm:$0xf]  ;;  %v2124_v24 = vld [vmem:[#allocation11 + $0x8] sm:$0xf0]  ;;  %v2430_v7 = vld [vmem:[#allocation11 + $0xb4] sm:$0xf] }
 0x19a   :  { %1520 = vmatpush.bf16.msrb.mxu0 %v2167_v26  ;;  %v2287_v16 = vor.u32 %v2448_v12, %v2284_v13  ;;  %v2408_v22 = vld [vmem:[#allocation11 + $0x4] sm:$0xf]  ;;  %v2276_v26 = vld [vmem:[#allocation11 + $0x138] sm:$0xf0]  ;;  %v2204_v12 = vld [vmem:[#allocation11 + $0xa8] sm:$0xf0] }
 0x19b   :  { %v2212_v8 = vld [vmem:[#allocation11 + $0xb8] sm:$0xf0] }
 0x19c   :  { %1463 = vmatpush.bf16.msra.mxu1 %v2163_v21  ;;  %v2409_v21 = vld [vmem:[#allocation11 + $0x4] sm:$0xf0] }
 0x19d   :  { %1503 = vmatpush.bf16.msra.mxu3 %v2275_v25  ;;  %v2123_v23 = vor.u32 %v2409_v21, %v2122_v20  ;;  %v2446_v25 = vld [vmem:[#allocation11 + $0x134] sm:$0xf]  ;;  %v2196_v20 = vld [vmem:[#allocation11 + $0x98] sm:$0xf0] }
 0x19e   :  { %1521 = vmatpush.bf16.msrb.mxu0 %v2159_v38  ;;  %v2236_v38 = vld [vmem:[#allocation11 + $0xe8] sm:$0xf0] }
 0x19f   :  { %2119 = vmatmul.msk.bf16.gmra.mxu0 %vm2932_vm10, %v2118_v27  ;;  %v2186_v27 = vld [vmem:[#allocation11 + $0x80] sm:$0xf] }
 0x1a0   :  { %v2187_v29 = vor.u32 %v2425_v28, %v2186_v27  ;;  %v2127_v27 = vor.u32 %v2408_v22, %v2124_v24  ;;  %v2279_v28 = vor.u32 %v2446_v25, %v2276_v26 }
 0x1a1   :  { %1504 = vmatpush.bf16.msra.mxu3 %v2267_v37  ;;  %v2436_v37 = vld [vmem:[#allocation11 + $0xe4] sm:$0xf] }
 0x1a2   :  { %1487 = vmatpush.bf16.msra.mxu2 %v2187_v29  ;;  %1522 = vmatpush.bf16.msrb.mxu0 %v2151_v52  ;;  %v2228_v52 = vld [vmem:[#allocation11 + $0xd8] sm:$0xf0] }
 0x1a5   :  { %1505 = vmatpush.bf16.msra.mxu3 %v2259_v51  ;;  %v2434_v51 = vld [vmem:[#allocation11 + $0xd4] sm:$0xf] }
 0x1a6   :  { %1556 = vmatpush.bf16.msrb.mxu2 %v2311_v41  ;;  %1523 = vmatpush.bf16.msrb.mxu0 %v2143_v2  ;;  %v2239_v41 = vor.u32 %v2436_v37, %v2236_v38  ;;  %v2231_v54 = vor.u32 %v2434_v51, %v2228_v52  ;;  %v1622_v51 = vld [vmem:[#allocation13 + $0x78] sm:$0xff]  ;;  %v1621_v52 = vld [vmem:[#allocation13 + $0x70] sm:$0xff] }
 0x1a7   :  { %2113 = vmatmul.msk.bf16.gmra.mxu2 %vm2927_vm9, %v2112_v31  ;;  %v2417_v31 = vld [vmem:[#allocation11 + $0x44] sm:$0xf0] }
 0x1a8   :  { %v2155_v33 = vor.u32 %v2417_v31, %v2154_v30  ;;  %v2438_v30 = vld [vmem:[#allocation11 + $0xf4] sm:$0xf]  ;;  %v2244_v31 = vld [vmem:[#allocation11 + $0xf8] sm:$0xf0] }
 0x1a9   :  { %1506 = vmatpush.bf16.msra.mxu3 %v2251_v0  ;;  %v2247_v32 = vor.u32 %v2438_v30, %v2244_v31 }
 0x1aa   :  { %1464 = vmatpush.bf16.msra.mxu1 %v2155_v33  ;;  %1557 = vmatpush.bf16.msrb.mxu2 %v2303_v55  ;;  %v2444_v33 = vld [vmem:[#allocation11 + $0x124] sm:$0xf] }
 0x1ab   :  { %1524 = vmatpush.bf16.msrb.mxu0 %v2135_v15  ;;  %v2271_v36 = vor.u32 %v2444_v33, %v2268_v34  ;;  %v2440_v55 = vld [vmem:[#allocation11 + $0x104] sm:$0xf]  ;;  %v2207_v15 = vor.u32 %v2428_v11, %v2204_v12  ;;  %v2188_v33 = vld [vmem:[#allocation11 + $0x88] sm:$0xf0] }
 0x1ac   :  { %v2255_v57 = vor.u32 %v2440_v55, %v2252_v56  ;;  %v1617_v55 = vld [vmem:[#allocation13 + $0x50] sm:$0xff]  ;;  %v1608_v12 = vld [vmem:[#allocation13 + $0x8] sm:$0xff] }
 0x1ad   :  { %1652 = vmatpush.msrb.mxu3 %v1622_v51 }
 0x1ae   :  { %1465 = vmatpush.bf16.msra.mxu1 %v2147_v45  ;;  %1558 = vmatpush.bf16.msrb.mxu2 %v2295_v5 }
 0x1af   :  { %1525 = vmatpush.bf16.msrb.mxu0 %v2127_v27  ;;  %1653 = vmatpush.msrb.mxu3 %v1621_v52 }
 0x1b2   :  { %1466 = vmatpush.bf16.msra.mxu1 %v2139_v59  ;;  %1559 = vmatpush.bf16.msrb.mxu2 %v2287_v16  ;;  %v2220_v59 = vld [vmem:[#allocation11 + $0xc8] sm:$0xf0] }
 0x1b3   :  { %v2223_v62 = vor.u32 %v2432_v58, %v2220_v59  ;;  %v3041_v58 = vld [vmem:[%s3067_s8] sm:$0x3] }
 0x1b4   :  { %v1218_v51 = vperm.slane %v3041_v58, 1 }
 0x1b6   :  { %1467 = vmatpush.bf16.msra.mxu1 %v2131_v10  ;;  %1560 = vmatpush.bf16.msrb.mxu2 %v2279_v28  ;;  %v2215_v10 = vor.u32 %v2430_v7, %v2212_v8  ;;  %v1610_v7 = vld [vmem:[#allocation13 + $0x18] sm:$0xff] }
 0x1ba   :  { %1468 = vmatpush.bf16.msra.mxu1 %v2123_v23  ;;  %1561 = vmatpush.bf16.msrb.mxu2 %v2271_v36 }
 0x1be   :  { %1537 = vmatpush.bf16.msrb.mxu1 %v2247_v32  ;;  %1562 = vmatpush.bf16.msrb.mxu2 %v2263_v46  ;;  %v2424_v32 = vld [vmem:[#allocation11 + $0x84] sm:$0xf] }
 0x1c2   :  { %1538 = vmatpush.bf16.msrb.mxu1 %v2239_v41  ;;  %1563 = vmatpush.bf16.msrb.mxu2 %v2255_v57  ;;  %v1615_v57 = vld [vmem:[#allocation13 + $0x40] sm:$0xff] }
 0x1c6   :  { %1539 = vmatpush.bf16.msrb.mxu1 %v2231_v54  ;;  %v1618_v54 = vld [vmem:[#allocation13 + $0x58] sm:$0xff] }
 0x1ca   :  { %1540 = vmatpush.bf16.msrb.mxu1 %v2223_v62  ;;  %v1217_v62 = vperm.slane %v3041_v58, 0 }
 0x1ce   :  { %1541 = vmatpush.bf16.msrb.mxu1 %v2215_v10 }
 0x1d2   :  { %1542 = vmatpush.bf16.msrb.mxu1 %v2207_v15  ;;  %v1607_v15 = vld [vmem:[#allocation13] sm:$0xff] }
 0x207   :  { %v1104_v6 = vpop.f32.mrf.mxu3 }
 0x20c   :  { %v1123_v14 = vpop.f32.mrf.mxu0 }
 0x20f   :  { %v1106_v35 = vpop.f32.mrf.mxu3 }
 0x214   :  { %v1125_v43 = vpop.f32.mrf.mxu0 }
 0x217   :  { %v1109_v0 = vpop.f32.mrf.mxu3 }
 0x21a   :  { %v1085_v19 = vpop.f32.mrf.mxu2 }
 0x21b   :  { %v1086_v29 = vadd.f32 %v2995_v17, %v1085_v19  ;;  %v2426_v19 = vld [vmem:[#allocation11 + $0x94] sm:$0xf] }
 0x21c   :  { %v1128_v5 = vpop.f32.mrf.mxu0  ;;  %v2199_v28 = vor.u32 %v2426_v19, %v2196_v20  ;;  %v1637_v20 = vld [vmem:[#allocation13 + $0xf0] sm:$0xff] }
 0x21d   :  { %v1105_v40 = vadd.f32 %v1104_v6, %v1086_v29 }
 0x21e   :  { %1543 = vmatpush.bf16.msrb.mxu1 %v2199_v28  ;;  %v1634_v28 = vld [vmem:[#allocation13 + $0xd8] sm:$0xff] }
 0x21f   :  { %v1124_v48 = vadd.f32 %v1123_v14, %v1105_v40  ;;  %v1111_v24 = vpop.f32.mrf.mxu3 }
 0x221   :  { %v1133_v60 = vmax.f32 %v1124_v48, 0.0 }
 0x222   :  { %v1087_v44 = vpop.f32.mrf.mxu2 }
 0x223   :  { %v1088_v45 = vadd.f32 %v2995_v17, %v1087_v44  ;;  %v1149_v21 = vrot.slane %v1133_v60, 1  ;;  %v1137_v36 = vrot.slane %v1133_v60, 7 }
 0x224   :  { %v1130_v29 = vpop.f32.mrf.mxu0 }
 0x225   :  { %v1107_v50 = vadd.f32 %v1106_v35, %v1088_v45  ;;  %v2191_v35 = vor.u32 %v2424_v32, %v2188_v33 }
 0x227   :  { %v1126_v53 = vadd.f32 %v1125_v43, %v1107_v50  ;;  %1544 = vmatpush.bf16.msrb.mxu1 %v2191_v35 }
 0x229   :  { %v2999_v61 = vmax.f32 %v1126_v53, 0.0  ;;  %v1620_v53 = vld [vmem:[#allocation13 + $0x68] sm:$0xff] }
 0x22a   :  { %v1090_v2 = vpop.f32.mrf.mxu2  ;;  %1654 = vmatpush.msrb.mxu3 %v1620_v53 }
 0x22b   :  { %v1091_v3 = vadd.f32 %v2995_v17, %v1090_v2  ;;  %v1162_v4 = vpack.c.bf16 %v2999_v61, %v1133_v60  ;;  %v1150_v13 = vrot.slane %v2999_v61, 1  ;;  %v1614_v60 = vld [vmem:[#allocation13 + $0x38] sm:$0xff]  ;;  %v1611_v2 = vld [vmem:[#allocation13 + $0x20] sm:$0xff] }
 0x22c   :  { %1655 = vmatpush.msrb.mxu3 %v1619_v18 }
 0x22d   :  { %v1110_v6 = vadd.f32 %v1109_v0, %v1091_v3  ;;  %1488 = vmatmul.bf16.vlgmr.msra.gmra.mxu2 %v1162_v4  ;;  %v1155_v27 = vsel %vm283_vm1, %v1149_v21, %v1150_v13  ;;  %v1612_v0 = vld [vmem:[#allocation13 + $0x28] sm:$0xff] }
 0x22e   :  { %1656 = vmatpush.msrb.mxu3 %v1618_v54  ;;  %v1626_v54 = vld [vmem:[#allocation13 + $0x98] sm:$0xff] }
 0x22f   :  { %v1129_v9 = vadd.f32 %v1128_v5, %v1110_v6 }
 0x230   :  { %1657 = vmatpush.msrb.mxu3 %v1617_v55 }
 0x231   :  { %v1135_v14 = vmax.f32 %v1129_v9, 0.0  ;;  %v1609_v9 = vld [vmem:[#allocation13 + $0x10] sm:$0xff] }
 0x232   :  { %v1092_v16 = vpop.f32.mrf.mxu2  ;;  %1658 = vmatpush.msrb.mxu3 %v1616_v63  ;;  %v1625_v63 = vld [vmem:[#allocation13 + $0x90] sm:$0xff] }
 0x233   :  { %v1151_v22 = vrot.slane %v1135_v14, 1  ;;  %v1093_v23 = vadd.f32 %v2995_v17, %v1092_v16  ;;  %v1138_v17 = vrot.slane %v2999_v61, 7  ;;  %v1139_v46 = vrot.slane %v1135_v14, 7  ;;  %v1613_v61 = vld [vmem:[#allocation13 + $0x30] sm:$0xff] }
 0x234   :  { %1659 = vmatpush.msrb.mxu3 %v1615_v57 }
 0x235   :  { %v1112_v25 = vadd.f32 %v1111_v24, %v1093_v23  ;;  %v1154_v26 = vsel %vm283_vm1, %v1150_v13, %v1151_v22  ;;  %v1143_v39 = vsel %vm262_vm0, %v1137_v36, %v1138_v17  ;;  %v1142_v47 = vsel %vm262_vm0, %v1138_v17, %v1139_v46  ;;  %v1636_v24 = vld [vmem:[#allocation13 + $0xe8] sm:$0xff] }
 0x236   :  { %v2319_v30 = vpack.c.bf16 %v1154_v26, %v1155_v27  ;;  %1660 = vmatpush.msrb.mxu3 %v1614_v60  ;;  %v1624_v60 = vld [vmem:[#allocation13 + $0x88] sm:$0xff] }
 0x237   :  { %v1131_v31 = vadd.f32 %v1130_v29, %v1112_v25  ;;  %v1635_v25 = vld [vmem:[#allocation13 + $0xe0] sm:$0xff] }
 0x238   :  { %2320 = vmatmul.msk.bf16.vlgmr.msra.gmra.mxu3 %vm2908_vm6, %v2319_v30 }
 0x239   :  { %v1136_v34 = vmax.f32 %v1131_v31, 0.0  ;;  %1661 = vmatpush.msrb.mxu3 %v1613_v61  ;;  %v1633_v31 = vld [vmem:[#allocation13 + $0xd0] sm:$0xff] }
 0x23b   :  { %v1140_v37 = vrot.slane %v1136_v34, 7  ;;  %v1165_v38 = vpack.c.bf16 %v1136_v34, %v1135_v14  ;;  %v1152_v42 = vrot.slane %v1136_v34, 1  ;;  %1662 = vmatpush.msrb.mxu3 %v1612_v0  ;;  %v1638_v14 = vld [vmem:[#allocation13 + $0xf8] sm:$0xff]  ;;  %v1632_v34 = vld [vmem:[#allocation13 + $0xc8] sm:$0xff] }
 0x23c   :  { %1672 = vmatpush.msra.mxu0 %v1638_v14 }
 0x23d   :  { %1493 = vmatmul.bf16.gmra.mxu2 %v1165_v38  ;;  %v1144_v40 = vsel %vm262_vm0, %v1140_v37, %v1137_v36  ;;  %v1153_v43 = vsel %vm283_vm1, %v1151_v22, %v1152_v42  ;;  %v1156_v44 = vsel %vm283_vm1, %v1152_v42, %v1149_v21  ;;  %v1141_v48 = vsel %vm262_vm0, %v1139_v46, %v1140_v37  ;;  %v1630_v42 = vld [vmem:[#allocation13 + $0xb8] sm:$0xff]  ;;  %v1629_v46 = vld [vmem:[#allocation13 + $0xb0] sm:$0xff] }
 0x23e   :  { %v2313_v41 = vpack.c.bf16 %v1143_v39, %v1144_v40  ;;  %v2322_v45 = vpack.c.bf16 %v1156_v44, %v1153_v43  ;;  %v2316_v50 = vpack.c.bf16 %v1141_v48, %v1142_v47  ;;  %1663 = vmatpush.msrb.mxu3 %v1611_v2  ;;  %1673 = vmatpush.msra.mxu0 %v1637_v20 }
 0x240   :  { %2314 = vmatmul.msk.bf16.vlgmr.msra.gmra.mxu1 %vm2903_vm5, %v2313_v41  ;;  %2326 = vmatmul.msk.bf16.vlgmr.msrb.gmra.mxu0 %vm2903_vm5, %v2313_v41 }
 0x241   :  { %1664 = vmatpush.msrb.mxu3 %v1610_v7  ;;  %1674 = vmatpush.msra.mxu0 %v1636_v24 }
 0x243   :  { %1665 = vmatpush.msrb.mxu3 %v1609_v9  ;;  %1675 = vmatpush.msra.mxu0 %v1635_v25  ;;  %v1708_v9 = vld [vmem:[#allocation14 + $0x78] sm:$0xff] }
 0x244   :  { %1713 = vmatpush.msra.mxu1 %v1708_v9 }
 0x245   :  { %1666 = vmatpush.msrb.mxu3 %v1608_v12  ;;  %1676 = vmatpush.msra.mxu0 %v1634_v28 }
 0x247   :  { %1667 = vmatpush.msrb.mxu3 %v1607_v15  ;;  %1677 = vmatpush.msra.mxu0 %v1633_v31 }
 0x248   :  { %2323 = vmatmul.msk.bf16.gmra.mxu3 %vm2932_vm10, %v2322_v45 }
 0x249   :  { %1678 = vmatpush.msra.mxu0 %v1632_v34 }
 0x24d   :  { %2332 = vmatmul.msk.bf16.vlgmr.msrb.gmra.mxu2 %vm2908_vm6, %v2319_v30 }
 0x250   :  { %2317 = vmatmul.msk.bf16.gmra.mxu1 %vm2927_vm9, %v2316_v50  ;;  %2329 = vmatmul.msk.bf16.gmra.mxu0 %vm2927_vm9, %v2316_v50  ;;  %v1628_v50 = vld [vmem:[#allocation13 + $0xa8] sm:$0xff] }
 0x25d   :  { %2335 = vmatmul.msk.bf16.gmra.mxu2 %vm2932_vm10, %v2322_v45 }
 0x260   :  { %1545 = vmatmul.bf16.vlgmr.msrb.gmra.mxu1 %v1162_v4 }
 0x270   :  { %1550 = vmatmul.bf16.gmra.mxu1 %v1165_v38  ;;  %v1631_v38 = vld [vmem:[#allocation13 + $0xc0] sm:$0xff] }
 0x271   :  { %1679 = vmatpush.msra.mxu0 %v1631_v38 }
 0x273   :  { %1680 = vmatpush.msra.mxu0 %v1630_v42  ;;  %v1705_v42 = vld [vmem:[#allocation14 + $0x60] sm:$0xff] }
 0x275   :  { %1681 = vmatpush.msra.mxu0 %v1629_v46  ;;  %v1701_v46 = vld [vmem:[#allocation14 + $0x40] sm:$0xff] }
 0x277   :  { %1682 = vmatpush.msra.mxu0 %v1628_v50  ;;  %v1698_v50 = vld [vmem:[#allocation14 + $0x28] sm:$0xff] }
 0x2b0   :  { %v1489_v49 = vpop.f32.mrf.mxu2 }
 0x2b8   :  { %v1491_v56 = vpop.f32.mrf.mxu2 }
 0x2bb   :  { %v1508_v1 = vpop.f32.mrf.mxu3 }
 0x2bd   :  { %v1470_v59 = vpop.f32.mrf.mxu1  ;;  %v1527_v29 = vpop.f32.mrf.mxu0 }
 0x2be   :  { %v1471_v3 = vadd.f32 %v1470_v59, %v1217_v62 }
 0x2c0   :  { %v1494_v4 = vpop.f32.mrf.mxu2  ;;  %v1490_v10 = vadd.f32 %v1489_v49, %v1471_v3  ;;  %v1627_v49 = vld [vmem:[#allocation13 + $0xa0] sm:$0xff] }
 0x2c1   :  { %1683 = vmatpush.msra.mxu0 %v1627_v49  ;;  %v1623_v3 = vld [vmem:[#allocation13 + $0x80] sm:$0xff]  ;;  %v1695_v49 = vld [vmem:[#allocation14 + $0x10] sm:$0xff] }
 0x2c2   :  { %v1509_v16 = vadd.f32 %v1508_v1, %v1490_v10  ;;  %v1707_v10 = vld [vmem:[#allocation14 + $0x70] sm:$0xff] }
 0x2c3   :  { %v1510_v5 = vpop.f32.mrf.mxu3  ;;  %1684 = vmatpush.msra.mxu0 %v1626_v54  ;;  %1714 = vmatpush.msra.mxu1 %v1707_v10  ;;  %v1749_v54 = vld [vmem:[#allocation16 + $0x78] sm:$0xff]  ;;  %v1735_v10 = vld [vmem:[#allocation16 + $0x8] sm:$0xff] }
 0x2c4   :  { %1754 = vmatpush.msra.mxu2 %v1749_v54 }
 0x2c5   :  { %v1472_v6 = vpop.f32.mrf.mxu1  ;;  %v1529_v44 = vpop.f32.mrf.mxu0  ;;  %1685 = vmatpush.msra.mxu0 %v1625_v63  ;;  %v1747_v63 = vld [vmem:[#allocation16 + $0x68] sm:$0xff] }
 0x2c6   :  { %v1473_v8 = vadd.f32 %v1472_v6, %v1217_v62  ;;  %v1530_v1 = vadd.f32 %v1529_v44, %v1218_v51  ;;  %v1703_v44 = vld [vmem:[#allocation14 + $0x50] sm:$0xff] }
 0x2c7   :  { %1686 = vmatpush.msra.mxu0 %v1624_v60  ;;  %v1742_v60 = vld [vmem:[#allocation16 + $0x40] sm:$0xff] }
 0x2c8   :  { %v1492_v11 = vadd.f32 %v1491_v56, %v1473_v8  ;;  %v1496_v22 = vpop.f32.mrf.mxu2  ;;  %v1528_v56 = vadd.f32 %v1527_v29, %v1218_v51 }
 0x2c9   :  { %1687 = vmatpush.msra.mxu0 %v1623_v3  ;;  %v1737_v3 = vld [vmem:[#allocation16 + $0x18] sm:$0xff] }
 0x2ca   :  { %v1511_v13 = vadd.f32 %v1510_v5, %v1492_v11 }
 0x2cb   :  { %v1513_v23 = vpop.f32.mrf.mxu3 }
 0x2cc   :  { %v1575_v21 = vadd.f32 %v1511_v13, %v1509_v16 }
 0x2cd   :  { %v1475_v19 = vpop.f32.mrf.mxu1  ;;  %v1532_v58 = vpop.f32.mrf.mxu0 }
 0x2ce   :  { %v1576_v26 = vrot.slane %v1575_v21, 4  ;;  %v1476_v27 = vadd.f32 %v1475_v19, %v1217_v62  ;;  %v1533_v19 = vadd.f32 %v1532_v58, %v1218_v51  ;;  %v2483_v58 = vld [vmem:[%s3069_s10] ss:$0 sm:$0xff] }
 0x2d0   :  { %v1577_v32 = vadd.f32 %v1576_v26, %v1575_v21  ;;  %v1495_v33 = vadd.f32 %v1494_v4, %v1476_v27  ;;  %v1565_v36 = vpop.f32.mrf.mxu2 }
 0x2d2   :  { %v1578_v39 = vrot.slane %v1577_v32, 2  ;;  %v1514_v40 = vadd.f32 %v1513_v23, %v1495_v33 }
 0x2d3   :  { %v1515_v37 = vpop.f32.mrf.mxu3 }
 0x2d4   :  { %v1579_v47 = vadd.f32 %v1578_v39, %v1577_v32 }
 0x2d5   :  { %v1477_v30 = vpop.f32.mrf.mxu1  ;;  %v1534_v16 = vpop.f32.mrf.mxu0 }
 0x2d6   :  { %v1478_v17 = vadd.f32 %v1477_v30, %v1217_v62  ;;  %v1580_v18 = vrot.slane %v1579_v47, 1  ;;  %v1535_v20 = vadd.f32 %v1534_v16, %v1218_v51  ;;  %v1697_v51 = vld [vmem:[#allocation14 + $0x20] sm:$0xff]  ;;  %v2485_v16 = vld [vmem:[%s3073_s14] ss:$0 sm:$0xff] }
 0x2d8   :  { %v1497_v35 = vadd.f32 %v1496_v22, %v1478_v17  ;;  %v1567_v55 = vpop.f32.mrf.mxu2  ;;  %v1581_v0 = vadd.f32 %v1580_v18, %v1579_v47  ;;  %v1699_v47 = vld [vmem:[#allocation14 + $0x30] sm:$0xff]  ;;  %v1693_v18 = vld [vmem:[#allocation14] sm:$0xff] }
 0x2da   :  { %v1516_v41 = vadd.f32 %v1515_v37, %v1497_v35  ;;  %v1603_v7 = vmul.f32 0.00390625, %v1581_v0  ;;  %v1739_v0 = vld [vmem:[#allocation16 + $0x28] sm:$0xff] }
 0x2dc   :  { %v1589_v43 = vadd.f32 %v1516_v41, %v1514_v40  ;;  %v1706_v41 = vld [vmem:[#allocation14 + $0x68] sm:$0xff] }
 0x2dd   :  { %v1546_v45 = vpop.f32.mrf.mxu1  ;;  %1715 = vmatpush.msra.mxu1 %v1706_v41 }
 0x2de   :  { %v1590_v48 = vrot.slane %v1589_v43, 4  ;;  %v1547_v61 = vadd.f32 %v1546_v45, %v1528_v56  ;;  %v1702_v45 = vld [vmem:[#allocation14 + $0x48] sm:$0xff]  ;;  %v1746_v56 = vld [vmem:[#allocation16 + $0x60] sm:$0xff] }
 0x2df   :  { %1716 = vmatpush.msra.mxu1 %v1705_v42 }
 0x2e0   :  { %v1591_v52 = vadd.f32 %v1590_v48, %v1589_v43  ;;  %v1566_v6 = vadd.f32 %v1565_v36, %v1547_v61  ;;  %v1570_v13 = vpop.f32.mrf.mxu2  ;;  %v1704_v43 = vld [vmem:[#allocation14 + $0x58] sm:$0xff] }
 0x2e1   :  { %1717 = vmatpush.msra.mxu1 %v1704_v43  ;;  %v1700_v48 = vld [vmem:[#allocation14 + $0x38] sm:$0xff] }
 0x2e2   :  { %v1592_v53 = vrot.slane %v1591_v52, 2  ;;  %v1741_v61 = vld [vmem:[#allocation16 + $0x38] sm:$0xff] }
 0x2e3   :  { %1718 = vmatpush.msra.mxu1 %v1703_v44 }
 0x2e4   :  { %v1593_v57 = vadd.f32 %v1592_v53, %v1591_v52  ;;  %v1696_v52 = vld [vmem:[#allocation14 + $0x18] sm:$0xff]  ;;  %v1694_v53 = vld [vmem:[#allocation14 + $0x8] sm:$0xff] }
 0x2e5   :  { %v1548_v59 = vpop.f32.mrf.mxu1  ;;  %1719 = vmatpush.msra.mxu1 %v1702_v45 }
 0x2e6   :  { %v1549_v62 = vadd.f32 %v1548_v59, %v1530_v1  ;;  %v1594_v2 = vrot.slane %v1593_v57, 1  ;;  %v1745_v1 = vld [vmem:[#allocation16 + $0x58] sm:$0xff]  ;;  %v1743_v59 = vld [vmem:[#allocation16 + $0x48] sm:$0xff] }
 0x2e7   :  { %1720 = vmatpush.msra.mxu1 %v1701_v46 }
 0x2e8   :  { %v1568_v4 = vadd.f32 %v1567_v55, %v1549_v62  ;;  %v1595_v5 = vadd.f32 %v1594_v2, %v1593_v57  ;;  %v1572_v25 = vpop.f32.mrf.mxu2  ;;  %v1748_v55 = vld [vmem:[#allocation16 + $0x70] sm:$0xff]  ;;  %v1738_v2 = vld [vmem:[#allocation16 + $0x20] sm:$0xff] }
 0x2e9   :  { %1721 = vmatpush.msra.mxu1 %v1700_v48  ;;  %1755 = vmatpush.msra.mxu2 %v1748_v55  ;;  %v1744_v57 = vld [vmem:[#allocation16 + $0x50] sm:$0xff] }
 0x2ea   :  { %v1605_v8 = vmul.f32 0.00390625, %v1595_v5  ;;  %v1582_v11 = vadd.f32 %v1568_v4, %v1566_v6  ;;  %v1740_v62 = vld [vmem:[#allocation16 + $0x30] sm:$0xff] }
 0x2eb   :  { %1722 = vmatpush.msra.mxu1 %v1699_v47  ;;  %1756 = vmatpush.msra.mxu2 %v1747_v63  ;;  %v1736_v5 = vld [vmem:[#allocation16 + $0x10] sm:$0xff] }
 0x2ec   :  { %v1648_v12 = vsel %vm1647_vm11, %v1605_v8, %v1603_v7  ;;  %v1583_v15 = vrot.slane %v1582_v11, 4 }
 0x2ed   :  { %v1551_v14 = vpop.f32.mrf.mxu1  ;;  %1668 = vmatmul.f32.vlgmr.msrb.gmra.mxu3 %v1648_v12  ;;  %1723 = vmatpush.msra.mxu1 %v1698_v50  ;;  %v2484_v12 = vld [vmem:[%s3071_s12] ss:$0 sm:$0xff] }
 0x2ee   :  { %v1584_v21 = vadd.f32 %v1583_v15, %v1582_v11  ;;  %v1552_v22 = vadd.f32 %v1551_v14, %v1533_v19  ;;  %1757 = vmatpush.msra.mxu2 %v1746_v56  ;;  %v1734_v11 = vld [vmem:[#allocation16] sm:$0xff] }
 0x2ef   :  { %1724 = vmatpush.msra.mxu1 %v1697_v51 }
 0x2f0   :  { %v1585_v26 = vrot.slane %v1584_v21, 2  ;;  %v1571_v27 = vadd.f32 %v1570_v13, %v1552_v22  ;;  %1758 = vmatpush.msra.mxu2 %v1745_v1 }
 0x2f1   :  { %1725 = vmatpush.msra.mxu1 %v1696_v52 }
 0x2f2   :  { %v1586_v30 = vadd.f32 %v1585_v26, %v1584_v21  ;;  %1759 = vmatpush.msra.mxu2 %v1744_v57 }
 0x2f3   :  { %1726 = vmatpush.msra.mxu1 %v1695_v49 }
 0x2f4   :  { %v1587_v17 = vrot.slane %v1586_v30, 1  ;;  %1760 = vmatpush.msra.mxu2 %v1743_v59 }
 0x2f5   :  { %v1553_v23 = vpop.f32.mrf.mxu1  ;;  %1727 = vmatpush.msra.mxu1 %v1694_v53 }
 0x2f6   :  { %v1554_v24 = vadd.f32 %v1553_v23, %v1535_v20  ;;  %v1588_v35 = vadd.f32 %v1587_v17, %v1586_v30  ;;  %1761 = vmatpush.msra.mxu2 %v1742_v60 }
 0x2f7   :  { %1728 = vmatpush.msra.mxu1 %v1693_v18 }
 0x2f8   :  { %v1573_v28 = vadd.f32 %v1572_v25, %v1554_v24  ;;  %v1604_v38 = vmul.f32 0.00390625, %v1588_v35  ;;  %1762 = vmatpush.msra.mxu2 %v1741_v61 }
 0x2fa   :  { %v1596_v29 = vadd.f32 %v1573_v28, %v1571_v27  ;;  %1763 = vmatpush.msra.mxu2 %v1740_v62 }
 0x2fc   :  { %v1597_v31 = vrot.slane %v1596_v29, 4  ;;  %1764 = vmatpush.msra.mxu2 %v1739_v0 }
 0x2fe   :  { %v1598_v32 = vadd.f32 %v1597_v31, %v1596_v29  ;;  %1765 = vmatpush.msra.mxu2 %v1738_v2 }
 0x300   :  { %v1599_v33 = vrot.slane %v1598_v32, 2  ;;  %1766 = vmatpush.msra.mxu2 %v1737_v3 }
 0x302   :  { %v1600_v34 = vadd.f32 %v1599_v33, %v1598_v32  ;;  %1767 = vmatpush.msra.mxu2 %v1736_v5 }
 0x304   :  { %v1601_v36 = vrot.slane %v1600_v34, 1  ;;  %1768 = vmatpush.msra.mxu2 %v1735_v10 }
 0x306   :  { %v1602_v37 = vadd.f32 %v1601_v36, %v1600_v34  ;;  %1769 = vmatpush.msra.mxu2 %v1734_v11 }
 0x308   :  { %v1606_v39 = vmul.f32 0.00390625, %v1602_v37 }
 0x30a   :  { %v1649_v40 = vsel %vm1647_vm11, %v1606_v39, %v1604_v38 }
 0x30b   :  { %1688 = vmatmul.f32.vlgmr.msra.gmra.mxu0 %v1649_v40 }
 0x370   :  { %v1669_v4 = vpop.f32.mrf.mxu3 }
 0x371   :  { %v1670_v6 = vadd.f32 %v2483_v58, %v1669_v4 }
 0x388   :  { %v1689_v7 = vpop.f32.mrf.mxu0 }
 0x389   :  { %v1690_v8 = vadd.f32 %v1689_v7, %v1670_v6 }
 0x38b   :  { %v1692_v9 = vmax.f32 %v1690_v8, 0.0 }
 0x38d   :  { %1729 = vmatmul.f32.vlgmr.msra.gmra.mxu1 %v1692_v9 }
 0x40a   :  { %v1730_v13 = vpop.f32.mrf.mxu1 }
 0x40b   :  { %v1731_v14 = vadd.f32 %v2484_v12, %v1730_v13 }
 0x40d   :  { %v1733_v15 = vmax.f32 %v1731_v14, 0.0 }
 0x40f   :  { %1770 = vmatmul.f32.vlgmr.msra.gmra.mxu2 %v1733_v15 }
 0x492   :  { %v1771_v19 = vpop.f32.mrf.mxu2 }
 0x493   :  { %v1772_v20 = vadd.f32 %v2485_v16, %v1771_v19 }
 0x495   :  { %1774 = vst [vmem:[#allocation17] sm:$0x3] %v1772_v20 }
 0x496   :  { %1785 = dma.vmem_to_hbm [thread:$0]  %s1781_s18, 32, %s1783_s3, [#allocation4]  }
 0x497   :  { %2736 = dma.done.wait [#allocation4], 32  }
 0x498   :  { %2737 = vsyncadd [#allocation4], 4294967264 }
 0x499   :  { %1790 = vsyncpa [#allocation3], 1 }
 0x49a   :  { %1791 = vsyncpa [#allocation6], 1 }
 0x49b   :  { %1792 = vsyncpa [#allocation9], 1 }
 0x49c   :  { %1793 = vsyncpa [#allocation12], 1 }
 0x49d   :  { %1794 = vsyncpa [#allocation15], 1 }
 0x49e   :  { %1795 = vsyncpa [#allocation4], 1 }

</bundles_post_ra>
